<compile_context>
chip_gen: v7x
topology: tpu7x:2x2x1
jax: 0.10.0
libtpu: 0.0.40
codegen_flags: <defaults>
</compile_context>

<pallas_src>
import math

import jax
import jax.numpy as jnp
from jax.experimental import pallas as pl
from jax.experimental.pallas import tpu as pltpu


# ---------------------------------------------------------------------------
# Fused Pallas kernel: full SemGCNEquiv forward
# ---------------------------------------------------------------------------
def _make_fused_kernel(B, N, hid, num_layers, eps=1e-5):
    inv_cnt = 1.0 / float(B * hid)  # BN stats are over dims (0, 2) -> B*hid elems

    def kernel(x_ref, adj_ref, w_in_ref, b_in_ref, w_hid_ref, b_hid_ref,
               w_out_ref, b_out_ref, o_ref):
        # Block-diagonal adjacency (B*N, B*N); cast once for the MXU.
        adj_bf = adj_ref[...].astype(jnp.bfloat16)

        def gconv(h, w_cat_bf, b_row):
            # h: (B*N, C) f32; w_cat_bf = concat([W_self; W_neighbor]) (2C, Cout)
            # adjacency aggregation as one 2-D matmul over all batches.
            h_nb = jnp.dot(adj_bf, h.astype(jnp.bfloat16),
                           preferred_element_type=jnp.float32)        # (B*N, C)
            cat = jnp.concatenate([h, h_nb], axis=-1)                  # (B*N, 2C)
            out = jnp.dot(cat.astype(jnp.bfloat16), w_cat_bf,
                          preferred_element_type=jnp.float32)          # (B*N, Cout)
            return out + b_row                                         # bias (1, Cout)

        def bn_relu(h):
            # nn.BatchNorm1d(hid) on a (B, N, hid) tensor, training mode:
            # channel axis = node axis (N == hid), stats over dims (0, 2),
            # biased variance, affine weight=1 / bias=0.  One-pass stats.
            h3 = h.reshape(B, N, hid)
            s1 = jnp.sum(h3, axis=(0, 2), keepdims=True)
            s2 = jnp.sum(h3 * h3, axis=(0, 2), keepdims=True)
            mean = s1 * inv_cnt
            var = s2 * inv_cnt - mean * mean
            h3 = (h3 - mean) * jax.lax.rsqrt(var + eps)
            h3 = jnp.maximum(h3, 0.0)                                  # ReLU
            # Dropout(p=None) -> nn.Identity(): nothing to do.
            return h3.reshape(B * N, hid)

        # TODO(synk): BatchNorm1d running-mean/var buffer updates (a training
        # side effect) are not tracked; they do not affect the forward output.

        # gconv_input: EquivariantGraphConv + BN + ReLU
        x = x_ref[...].astype(jnp.float32)                             # (B*N, Cin)
        h = bn_relu(gconv(x,
                          w_in_ref[...].astype(jnp.bfloat16),
                          b_in_ref[...].astype(jnp.float32)))

        # residual graph-conv blocks (residual add fused in-kernel)
        for l in range(num_layers):
            res = h
            h = bn_relu(gconv(h,
                              w_hid_ref[2 * l].astype(jnp.bfloat16),
                              b_hid_ref[2 * l].astype(jnp.float32)))
            h = bn_relu(gconv(h,
                              w_hid_ref[2 * l + 1].astype(jnp.bfloat16),
                              b_hid_ref[2 * l + 1].astype(jnp.float32)))
            h = res + h

        # gconv_output: plain EquivariantGraphConv (no BN / ReLU)
        out = gconv(h,
                    w_out_ref[...].astype(jnp.bfloat16),
                    b_out_ref[...].astype(jnp.float32))
        o_ref[...] = out.astype(o_ref.dtype)

    return kernel


# ---------------------------------------------------------------------------
# Parameter construction (deterministic, shapes taken from the module __init__)
# ---------------------------------------------------------------------------
def _kaiming_uniform(key, shape):
    # Mirrors torch.nn.init.kaiming_uniform_ on a 2-D tensor (a=0):
    # fan_in = tensor.size(1), bound = sqrt(6 / fan_in).
    fan_in = shape[1]
    bound = math.sqrt(6.0 / fan_in)
    return jax.random.uniform(key, shape, jnp.float32, -bound, bound)


def _gconv_cat_params(key, cin, cout):
    k1, k2, k3 = jax.random.split(key, 3)
    w_self = _kaiming_uniform(k1, (cin, cout))
    w_nb = _kaiming_uniform(k2, (cin, cout))
    w_cat = jnp.concatenate([w_self, w_nb], axis=0)          # (2*cin, cout)
    # Module init sets bias to 0; use small deterministic values to exercise
    # the bias-add path of the kernel (synthetic weights, not a checkpoint).
    bias = 0.01 * jax.random.normal(k3, (1, cout), jnp.float32)
    return w_cat, bias


def init_semgcn_params(key, hid_dim, coords_dim=(2, 3), num_layers=4):
    keys = jax.random.split(key, 2 + 2 * num_layers)
    w_in, b_in = _gconv_cat_params(keys[0], coords_dim[0], hid_dim)
    w_out, b_out = _gconv_cat_params(keys[1], hid_dim, coords_dim[1])
    w_hid, b_hid = [], []
    for i in range(2 * num_layers):
        w, b = _gconv_cat_params(keys[2 + i], hid_dim, hid_dim)
        w_hid.append(w)
        b_hid.append(b)
    return {
        "w_in": w_in,                       # (2*coords_in, hid)
        "b_in": b_in,                       # (1, hid)
        "w_hid": jnp.stack(w_hid),          # (2*num_layers, 2*hid, hid)
        "b_hid": jnp.stack(b_hid),          # (2*num_layers, 1, hid)
        "w_out": w_out,                     # (2*hid, coords_out)
        "b_out": b_out,                     # (1, coords_out)
    }


def build_chain_adj(n):
    """Deterministic symmetric-normalized adjacency of a chain skeleton."""
    a = jnp.zeros((n, n), jnp.float32)
    idx = jnp.arange(n - 1)
    a = a.at[idx, idx + 1].set(1.0)
    a = a.at[idx + 1, idx].set(1.0)
    deg = jnp.sum(a, axis=1)
    d_inv_sqrt = jnp.where(deg > 0, 1.0 / jnp.sqrt(deg), 0.0)
    return a * d_inv_sqrt[:, None] * d_inv_sqrt[None, :]


# ---------------------------------------------------------------------------
# Full SemGCNEquiv forward — ONE pallas_call
# ---------------------------------------------------------------------------
@jax.jit
def semgcn_equiv_forward(params, x, adj):
    B, N, Cin = x.shape
    hid = params["w_hid"].shape[-1]
    Cout = params["w_out"].shape[-1]
    num_layers = params["w_hid"].shape[0] // 2
    # The reference module's BatchNorm1d(hid) applied to (B, N, hid) only
    # works when N == hid; fail loudly instead of computing wrong statistics.
    assert N == hid, "nn.BatchNorm1d(hid) on (B, N, hid) requires num_nodes == hid_dim"

    # Per-batch adjacency aggregation as a single block-diagonal 2-D matmul.
    adj_block = jnp.kron(jnp.eye(B, dtype=adj.dtype), adj)   # (B*N, B*N)
    x_flat = x.reshape(B * N, Cin)

    kernel = _make_fused_kernel(B, N, hid, num_layers)
    vmem = pl.BlockSpec(memory_space=pltpu.MemorySpace.VMEM)
    out_flat = pl.pallas_call(
        kernel,
        out_shape=jax.ShapeDtypeStruct((B * N, Cout), jnp.float32),
        in_specs=[vmem] * 8,
        out_specs=vmem,
    )(x_flat, adj_block,
      params["w_in"], params["b_in"],
      params["w_hid"], params["b_hid"],
      params["w_out"], params["b_out"])
    return out_flat.reshape(B, N, Cout)


if __name__ == "__main__":
    key = jax.random.PRNGKey(0)

    # Small shapes consistent with the module.  num_nodes must equal hid_dim
    # for the reference PyTorch code's BatchNorm1d usage to be valid.
    batch = 2
    num_nodes = 16
    hid_dim = 16
    coords_dim = (2, 3)
    num_layers = 4

    k_params, k_x = jax.random.split(key)
    adj = build_chain_adj(num_nodes)
    params = init_semgcn_params(k_params, hid_dim, coords_dim, num_layers)
    x = jax.random.normal(k_x, (batch, num_nodes, coords_dim[0]), jnp.float32)

    out = semgcn_equiv_forward(params, x, adj)
    out = jax.block_until_ready(out)

    assert out.shape == (batch, num_nodes, coords_dim[1]), out.shape
    assert bool(jnp.all(jnp.isfinite(out)))
    print("KERNEL_OK")
</pallas_src>

<mosaic_0001>
module attributes {stable_mosaic.version = 11 : i64} {
  func.func @kernel(%arg0: memref<32x2xf32, #tpu.memory_space<vmem>>, %arg1: memref<32x32xf32, #tpu.memory_space<vmem>>, %arg2: memref<4x16xf32, #tpu.memory_space<vmem>>, %arg3: memref<1x16xf32, #tpu.memory_space<vmem>>, %arg4: memref<8x32x16xf32, #tpu.memory_space<vmem>>, %arg5: memref<8x1x16xf32, #tpu.memory_space<vmem>>, %arg6: memref<32x3xf32, #tpu.memory_space<vmem>>, %arg7: memref<1x3xf32, #tpu.memory_space<vmem>>, %arg8: memref<32x3xf32, #tpu.memory_space<vmem>>) attributes {dimension_semantics = [], scalar_prefetch = 0 : i64, scratch_operands = 0 : i64, tpu.core_type = #tpu.core_type<tc>} {
    %c0 = arith.constant 0 : index
    %c0_0 = arith.constant 0 : index
    %0 = vector.load %arg1[%c0, %c0_0] : memref<32x32xf32, #tpu.memory_space<vmem>>, vector<32x32xf32>
    %1 = arith.truncf %0 : vector<32x32xf32> to vector<32x32xbf16>
    %c0_1 = arith.constant 0 : index
    %c0_2 = arith.constant 0 : index
    %2 = vector.load %arg0[%c0_1, %c0_2] : memref<32x2xf32, #tpu.memory_space<vmem>>, vector<32x2xf32>
    %c0_3 = arith.constant 0 : index
    %c0_4 = arith.constant 0 : index
    %3 = vector.load %arg2[%c0_3, %c0_4] : memref<4x16xf32, #tpu.memory_space<vmem>>, vector<4x16xf32>
    %4 = arith.truncf %3 : vector<4x16xf32> to vector<4x16xbf16>
    %c0_5 = arith.constant 0 : index
    %c0_6 = arith.constant 0 : index
    %5 = vector.load %arg3[%c0_5, %c0_6] : memref<1x16xf32, #tpu.memory_space<vmem>>, vector<1x16xf32>
    %6 = arith.truncf %2 : vector<32x2xf32> to vector<32x2xbf16>
    %cst = arith.constant dense<0.000000e+00> : vector<32x2xf32>
    %7 = tpu.matmul %1, %6, %cst {dimension_numbers = #tpu.dot_dimension_numbers<[1], [0], [0], [1], [0, 0, 1, 1], [], []>} : vector<32x32xbf16>, vector<32x2xbf16>, vector<32x2xf32> -> vector<32x2xf32>
    %8 = tpu.concatenate %2, %7 in 1 : vector<32x2xf32>, vector<32x2xf32> -> vector<32x4xf32>
    %9 = arith.truncf %8 : vector<32x4xf32> to vector<32x4xbf16>
    %cst_7 = arith.constant dense<0.000000e+00> : vector<32x16xf32>
    %10 = tpu.matmul %9, %4, %cst_7 {dimension_numbers = #tpu.dot_dimension_numbers<[1], [0], [0], [1], [0, 0, 1, 1], [], []>} : vector<32x4xbf16>, vector<4x16xbf16>, vector<32x16xf32> -> vector<32x16xf32>
    %11 = vector.broadcast %5 : vector<1x16xf32> to vector<32x16xf32>
    %12 = arith.addf %10, %11 : vector<32x16xf32>
    %13 = vector.shape_cast %12 : vector<32x16xf32> to vector<2x16x16xf32>
    %cst_8 = arith.constant dense<0.000000e+00> : vector<16xf32>
    %14 = vector.multi_reduction <add>, %13, %cst_8 [0, 2] : vector<2x16x16xf32> to vector<16xf32>
    %15 = vector.shape_cast %14 : vector<16xf32> to vector<1x16x1xf32>
    %16 = arith.mulf %13, %13 : vector<2x16x16xf32>
    %cst_9 = arith.constant dense<0.000000e+00> : vector<16xf32>
    %17 = vector.multi_reduction <add>, %16, %cst_9 [0, 2] : vector<2x16x16xf32> to vector<16xf32>
    %18 = vector.shape_cast %17 : vector<16xf32> to vector<1x16x1xf32>
    %cst_10 = arith.constant 3.125000e-02 : f32
    %19 = vector.broadcast %cst_10 : f32 to vector<1x16x1xf32>
    %20 = arith.mulf %15, %19 : vector<1x16x1xf32>
    %cst_11 = arith.constant 3.125000e-02 : f32
    %21 = vector.broadcast %cst_11 : f32 to vector<1x16x1xf32>
    %22 = arith.mulf %18, %21 : vector<1x16x1xf32>
    %23 = arith.mulf %20, %20 : vector<1x16x1xf32>
    %24 = arith.subf %22, %23 : vector<1x16x1xf32>
    %25 = vector.broadcast %20 : vector<1x16x1xf32> to vector<2x16x16xf32>
    %26 = arith.subf %13, %25 : vector<2x16x16xf32>
    %cst_12 = arith.constant 9.99999974E-6 : f32
    %27 = vector.broadcast %cst_12 : f32 to vector<1x16x1xf32>
    %28 = arith.addf %24, %27 : vector<1x16x1xf32>
    %29 = math.rsqrt %28 : vector<1x16x1xf32>
    %30 = vector.broadcast %29 : vector<1x16x1xf32> to vector<2x16x16xf32>
    %31 = arith.mulf %26, %30 : vector<2x16x16xf32>
    %cst_13 = arith.constant 0.000000e+00 : f32
    %32 = vector.broadcast %cst_13 : f32 to vector<2x16x16xf32>
    %33 = arith.maximumf %31, %32 : vector<2x16x16xf32>
    %34 = vector.shape_cast %33 : vector<2x16x16xf32> to vector<32x16xf32>
    %c0_14 = arith.constant 0 : index
    %c0_15 = arith.constant 0 : index
    %c0_16 = arith.constant 0 : index
    %35 = vector.load %arg4[%c0_14, %c0_15, %c0_16] : memref<8x32x16xf32, #tpu.memory_space<vmem>>, vector<1x32x16xf32>
    %36 = vector.shape_cast %35 : vector<1x32x16xf32> to vector<32x16xf32>
    %37 = arith.truncf %36 : vector<32x16xf32> to vector<32x16xbf16>
    %c0_17 = arith.constant 0 : index
    %c0_18 = arith.constant 0 : index
    %c0_19 = arith.constant 0 : index
    %38 = vector.load %arg5[%c0_17, %c0_18, %c0_19] : memref<8x1x16xf32, #tpu.memory_space<vmem>>, vector<1x1x16xf32>
    %39 = vector.shape_cast %38 : vector<1x1x16xf32> to vector<1x16xf32>
    %40 = arith.truncf %34 : vector<32x16xf32> to vector<32x16xbf16>
    %cst_20 = arith.constant dense<0.000000e+00> : vector<32x16xf32>
    %41 = tpu.matmul %1, %40, %cst_20 {dimension_numbers = #tpu.dot_dimension_numbers<[1], [0], [0], [1], [0, 0, 1, 1], [], []>} : vector<32x32xbf16>, vector<32x16xbf16>, vector<32x16xf32> -> vector<32x16xf32>
    %42 = tpu.concatenate %34, %41 in 1 : vector<32x16xf32>, vector<32x16xf32> -> vector<32x32xf32>
    %43 = arith.truncf %42 : vector<32x32xf32> to vector<32x32xbf16>
    %cst_21 = arith.constant dense<0.000000e+00> : vector<32x16xf32>
    %44 = tpu.matmul %43, %37, %cst_21 {dimension_numbers = #tpu.dot_dimension_numbers<[1], [0], [0], [1], [0, 0, 1, 1], [], []>} : vector<32x32xbf16>, vector<32x16xbf16>, vector<32x16xf32> -> vector<32x16xf32>
    %45 = vector.broadcast %39 : vector<1x16xf32> to vector<32x16xf32>
    %46 = arith.addf %44, %45 : vector<32x16xf32>
    %47 = vector.shape_cast %46 : vector<32x16xf32> to vector<2x16x16xf32>
    %cst_22 = arith.constant dense<0.000000e+00> : vector<16xf32>
    %48 = vector.multi_reduction <add>, %47, %cst_22 [0, 2] : vector<2x16x16xf32> to vector<16xf32>
    %49 = vector.shape_cast %48 : vector<16xf32> to vector<1x16x1xf32>
    %50 = arith.mulf %47, %47 : vector<2x16x16xf32>
    %cst_23 = arith.constant dense<0.000000e+00> : vector<16xf32>
    %51 = vector.multi_reduction <add>, %50, %cst_23 [0, 2] : vector<2x16x16xf32> to vector<16xf32>
    %52 = vector.shape_cast %51 : vector<16xf32> to vector<1x16x1xf32>
    %cst_24 = arith.constant 3.125000e-02 : f32
    %53 = vector.broadcast %cst_24 : f32 to vector<1x16x1xf32>
    %54 = arith.mulf %49, %53 : vector<1x16x1xf32>
    %cst_25 = arith.constant 3.125000e-02 : f32
    %55 = vector.broadcast %cst_25 : f32 to vector<1x16x1xf32>
    %56 = arith.mulf %52, %55 : vector<1x16x1xf32>
    %57 = arith.mulf %54, %54 : vector<1x16x1xf32>
    %58 = arith.subf %56, %57 : vector<1x16x1xf32>
    %59 = vector.broadcast %54 : vector<1x16x1xf32> to vector<2x16x16xf32>
    %60 = arith.subf %47, %59 : vector<2x16x16xf32>
    %cst_26 = arith.constant 9.99999974E-6 : f32
    %61 = vector.broadcast %cst_26 : f32 to vector<1x16x1xf32>
    %62 = arith.addf %58, %61 : vector<1x16x1xf32>
    %63 = math.rsqrt %62 : vector<1x16x1xf32>
    %64 = vector.broadcast %63 : vector<1x16x1xf32> to vector<2x16x16xf32>
    %65 = arith.mulf %60, %64 : vector<2x16x16xf32>
    %cst_27 = arith.constant 0.000000e+00 : f32
    %66 = vector.broadcast %cst_27 : f32 to vector<2x16x16xf32>
    %67 = arith.maximumf %65, %66 : vector<2x16x16xf32>
    %68 = vector.shape_cast %67 : vector<2x16x16xf32> to vector<32x16xf32>
    %c1 = arith.constant 1 : index
    %c0_28 = arith.constant 0 : index
    %c0_29 = arith.constant 0 : index
    %69 = vector.load %arg4[%c1, %c0_28, %c0_29] : memref<8x32x16xf32, #tpu.memory_space<vmem>>, vector<1x32x16xf32>
    %70 = vector.shape_cast %69 : vector<1x32x16xf32> to vector<32x16xf32>
    %71 = arith.truncf %70 : vector<32x16xf32> to vector<32x16xbf16>
    %c1_30 = arith.constant 1 : index
    %c0_31 = arith.constant 0 : index
    %c0_32 = arith.constant 0 : index
    %72 = vector.load %arg5[%c1_30, %c0_31, %c0_32] : memref<8x1x16xf32, #tpu.memory_space<vmem>>, vector<1x1x16xf32>
    %73 = vector.shape_cast %72 : vector<1x1x16xf32> to vector<1x16xf32>
    %74 = arith.truncf %68 : vector<32x16xf32> to vector<32x16xbf16>
    %cst_33 = arith.constant dense<0.000000e+00> : vector<32x16xf32>
    %75 = tpu.matmul %1, %74, %cst_33 {dimension_numbers = #tpu.dot_dimension_numbers<[1], [0], [0], [1], [0, 0, 1, 1], [], []>} : vector<32x32xbf16>, vector<32x16xbf16>, vector<32x16xf32> -> vector<32x16xf32>
    %76 = tpu.concatenate %68, %75 in 1 : vector<32x16xf32>, vector<32x16xf32> -> vector<32x32xf32>
    %77 = arith.truncf %76 : vector<32x32xf32> to vector<32x32xbf16>
    %cst_34 = arith.constant dense<0.000000e+00> : vector<32x16xf32>
    %78 = tpu.matmul %77, %71, %cst_34 {dimension_numbers = #tpu.dot_dimension_numbers<[1], [0], [0], [1], [0, 0, 1, 1], [], []>} : vector<32x32xbf16>, vector<32x16xbf16>, vector<32x16xf32> -> vector<32x16xf32>
    %79 = vector.broadcast %73 : vector<1x16xf32> to vector<32x16xf32>
    %80 = arith.addf %78, %79 : vector<32x16xf32>
    %81 = vector.shape_cast %80 : vector<32x16xf32> to vector<2x16x16xf32>
    %cst_35 = arith.constant dense<0.000000e+00> : vector<16xf32>
    %82 = vector.multi_reduction <add>, %81, %cst_35 [0, 2] : vector<2x16x16xf32> to vector<16xf32>
    %83 = vector.shape_cast %82 : vector<16xf32> to vector<1x16x1xf32>
    %84 = arith.mulf %81, %81 : vector<2x16x16xf32>
    %cst_36 = arith.constant dense<0.000000e+00> : vector<16xf32>
    %85 = vector.multi_reduction <add>, %84, %cst_36 [0, 2] : vector<2x16x16xf32> to vector<16xf32>
    %86 = vector.shape_cast %85 : vector<16xf32> to vector<1x16x1xf32>
    %cst_37 = arith.constant 3.125000e-02 : f32
    %87 = vector.broadcast %cst_37 : f32 to vector<1x16x1xf32>
    %88 = arith.mulf %83, %87 : vector<1x16x1xf32>
    %cst_38 = arith.constant 3.125000e-02 : f32
    %89 = vector.broadcast %cst_38 : f32 to vector<1x16x1xf32>
    %90 = arith.mulf %86, %89 : vector<1x16x1xf32>
    %91 = arith.mulf %88, %88 : vector<1x16x1xf32>
    %92 = arith.subf %90, %91 : vector<1x16x1xf32>
    %93 = vector.broadcast %88 : vector<1x16x1xf32> to vector<2x16x16xf32>
    %94 = arith.subf %81, %93 : vector<2x16x16xf32>
    %cst_39 = arith.constant 9.99999974E-6 : f32
    %95 = vector.broadcast %cst_39 : f32 to vector<1x16x1xf32>
    %96 = arith.addf %92, %95 : vector<1x16x1xf32>
    %97 = math.rsqrt %96 : vector<1x16x1xf32>
    %98 = vector.broadcast %97 : vector<1x16x1xf32> to vector<2x16x16xf32>
    %99 = arith.mulf %94, %98 : vector<2x16x16xf32>
    %cst_40 = arith.constant 0.000000e+00 : f32
    %100 = vector.broadcast %cst_40 : f32 to vector<2x16x16xf32>
    %101 = arith.maximumf %99, %100 : vector<2x16x16xf32>
    %102 = vector.shape_cast %101 : vector<2x16x16xf32> to vector<32x16xf32>
    %103 = arith.addf %34, %102 : vector<32x16xf32>
    %c2 = arith.constant 2 : index
    %c0_41 = arith.constant 0 : index
    %c0_42 = arith.constant 0 : index
    %104 = vector.load %arg4[%c2, %c0_41, %c0_42] : memref<8x32x16xf32, #tpu.memory_space<vmem>>, vector<1x32x16xf32>
    %105 = vector.shape_cast %104 : vector<1x32x16xf32> to vector<32x16xf32>
    %106 = arith.truncf %105 : vector<32x16xf32> to vector<32x16xbf16>
    %c2_43 = arith.constant 2 : index
    %c0_44 = arith.constant 0 : index
    %c0_45 = arith.constant 0 : index
    %107 = vector.load %arg5[%c2_43, %c0_44, %c0_45] : memref<8x1x16xf32, #tpu.memory_space<vmem>>, vector<1x1x16xf32>
    %108 = vector.shape_cast %107 : vector<1x1x16xf32> to vector<1x16xf32>
    %109 = arith.truncf %103 : vector<32x16xf32> to vector<32x16xbf16>
    %cst_46 = arith.constant dense<0.000000e+00> : vector<32x16xf32>
    %110 = tpu.matmul %1, %109, %cst_46 {dimension_numbers = #tpu.dot_dimension_numbers<[1], [0], [0], [1], [0, 0, 1, 1], [], []>} : vector<32x32xbf16>, vector<32x16xbf16>, vector<32x16xf32> -> vector<32x16xf32>
    %111 = tpu.concatenate %103, %110 in 1 : vector<32x16xf32>, vector<32x16xf32> -> vector<32x32xf32>
    %112 = arith.truncf %111 : vector<32x32xf32> to vector<32x32xbf16>
    %cst_47 = arith.constant dense<0.000000e+00> : vector<32x16xf32>
    %113 = tpu.matmul %112, %106, %cst_47 {dimension_numbers = #tpu.dot_dimension_numbers<[1], [0], [0], [1], [0, 0, 1, 1], [], []>} : vector<32x32xbf16>, vector<32x16xbf16>, vector<32x16xf32> -> vector<32x16xf32>
    %114 = vector.broadcast %108 : vector<1x16xf32> to vector<32x16xf32>
    %115 = arith.addf %113, %114 : vector<32x16xf32>
    %116 = vector.shape_cast %115 : vector<32x16xf32> to vector<2x16x16xf32>
    %cst_48 = arith.constant dense<0.000000e+00> : vector<16xf32>
    %117 = vector.multi_reduction <add>, %116, %cst_48 [0, 2] : vector<2x16x16xf32> to vector<16xf32>
    %118 = vector.shape_cast %117 : vector<16xf32> to vector<1x16x1xf32>
    %119 = arith.mulf %116, %116 : vector<2x16x16xf32>
    %cst_49 = arith.constant dense<0.000000e+00> : vector<16xf32>
    %120 = vector.multi_reduction <add>, %119, %cst_49 [0, 2] : vector<2x16x16xf32> to vector<16xf32>
    %121 = vector.shape_cast %120 : vector<16xf32> to vector<1x16x1xf32>
    %cst_50 = arith.constant 3.125000e-02 : f32
    %122 = vector.broadcast %cst_50 : f32 to vector<1x16x1xf32>
    %123 = arith.mulf %118, %122 : vector<1x16x1xf32>
    %cst_51 = arith.constant 3.125000e-02 : f32
    %124 = vector.broadcast %cst_51 : f32 to vector<1x16x1xf32>
    %125 = arith.mulf %121, %124 : vector<1x16x1xf32>
    %126 = arith.mulf %123, %123 : vector<1x16x1xf32>
    %127 = arith.subf %125, %126 : vector<1x16x1xf32>
    %128 = vector.broadcast %123 : vector<1x16x1xf32> to vector<2x16x16xf32>
    %129 = arith.subf %116, %128 : vector<2x16x16xf32>
    %cst_52 = arith.constant 9.99999974E-6 : f32
    %130 = vector.broadcast %cst_52 : f32 to vector<1x16x1xf32>
    %131 = arith.addf %127, %130 : vector<1x16x1xf32>
    %132 = math.rsqrt %131 : vector<1x16x1xf32>
    %133 = vector.broadcast %132 : vector<1x16x1xf32> to vector<2x16x16xf32>
    %134 = arith.mulf %129, %133 : vector<2x16x16xf32>
    %cst_53 = arith.constant 0.000000e+00 : f32
    %135 = vector.broadcast %cst_53 : f32 to vector<2x16x16xf32>
    %136 = arith.maximumf %134, %135 : vector<2x16x16xf32>
    %137 = vector.shape_cast %136 : vector<2x16x16xf32> to vector<32x16xf32>
    %c3 = arith.constant 3 : index
    %c0_54 = arith.constant 0 : index
    %c0_55 = arith.constant 0 : index
    %138 = vector.load %arg4[%c3, %c0_54, %c0_55] : memref<8x32x16xf32, #tpu.memory_space<vmem>>, vector<1x32x16xf32>
    %139 = vector.shape_cast %138 : vector<1x32x16xf32> to vector<32x16xf32>
    %140 = arith.truncf %139 : vector<32x16xf32> to vector<32x16xbf16>
    %c3_56 = arith.constant 3 : index
    %c0_57 = arith.constant 0 : index
    %c0_58 = arith.constant 0 : index
    %141 = vector.load %arg5[%c3_56, %c0_57, %c0_58] : memref<8x1x16xf32, #tpu.memory_space<vmem>>, vector<1x1x16xf32>
    %142 = vector.shape_cast %141 : vector<1x1x16xf32> to vector<1x16xf32>
    %143 = arith.truncf %137 : vector<32x16xf32> to vector<32x16xbf16>
    %cst_59 = arith.constant dense<0.000000e+00> : vector<32x16xf32>
    %144 = tpu.matmul %1, %143, %cst_59 {dimension_numbers = #tpu.dot_dimension_numbers<[1], [0], [0], [1], [0, 0, 1, 1], [], []>} : vector<32x32xbf16>, vector<32x16xbf16>, vector<32x16xf32> -> vector<32x16xf32>
    %145 = tpu.concatenate %137, %144 in 1 : vector<32x16xf32>, vector<32x16xf32> -> vector<32x32xf32>
    %146 = arith.truncf %145 : vector<32x32xf32> to vector<32x32xbf16>
    %cst_60 = arith.constant dense<0.000000e+00> : vector<32x16xf32>
    %147 = tpu.matmul %146, %140, %cst_60 {dimension_numbers = #tpu.dot_dimension_numbers<[1], [0], [0], [1], [0, 0, 1, 1], [], []>} : vector<32x32xbf16>, vector<32x16xbf16>, vector<32x16xf32> -> vector<32x16xf32>
    %148 = vector.broadcast %142 : vector<1x16xf32> to vector<32x16xf32>
    %149 = arith.addf %147, %148 : vector<32x16xf32>
    %150 = vector.shape_cast %149 : vector<32x16xf32> to vector<2x16x16xf32>
    %cst_61 = arith.constant dense<0.000000e+00> : vector<16xf32>
    %151 = vector.multi_reduction <add>, %150, %cst_61 [0, 2] : vector<2x16x16xf32> to vector<16xf32>
    %152 = vector.shape_cast %151 : vector<16xf32> to vector<1x16x1xf32>
    %153 = arith.mulf %150, %150 : vector<2x16x16xf32>
    %cst_62 = arith.constant dense<0.000000e+00> : vector<16xf32>
    %154 = vector.multi_reduction <add>, %153, %cst_62 [0, 2] : vector<2x16x16xf32> to vector<16xf32>
    %155 = vector.shape_cast %154 : vector<16xf32> to vector<1x16x1xf32>
    %cst_63 = arith.constant 3.125000e-02 : f32
    %156 = vector.broadcast %cst_63 : f32 to vector<1x16x1xf32>
    %157 = arith.mulf %152, %156 : vector<1x16x1xf32>
    %cst_64 = arith.constant 3.125000e-02 : f32
    %158 = vector.broadcast %cst_64 : f32 to vector<1x16x1xf32>
    %159 = arith.mulf %155, %158 : vector<1x16x1xf32>
    %160 = arith.mulf %157, %157 : vector<1x16x1xf32>
    %161 = arith.subf %159, %160 : vector<1x16x1xf32>
    %162 = vector.broadcast %157 : vector<1x16x1xf32> to vector<2x16x16xf32>
    %163 = arith.subf %150, %162 : vector<2x16x16xf32>
    %cst_65 = arith.constant 9.99999974E-6 : f32
    %164 = vector.broadcast %cst_65 : f32 to vector<1x16x1xf32>
    %165 = arith.addf %161, %164 : vector<1x16x1xf32>
    %166 = math.rsqrt %165 : vector<1x16x1xf32>
    %167 = vector.broadcast %166 : vector<1x16x1xf32> to vector<2x16x16xf32>
    %168 = arith.mulf %163, %167 : vector<2x16x16xf32>
    %cst_66 = arith.constant 0.000000e+00 : f32
    %169 = vector.broadcast %cst_66 : f32 to vector<2x16x16xf32>
    %170 = arith.maximumf %168, %169 : vector<2x16x16xf32>
    %171 = vector.shape_cast %170 : vector<2x16x16xf32> to vector<32x16xf32>
    %172 = arith.addf %103, %171 : vector<32x16xf32>
    %c4 = arith.constant 4 : index
    %c0_67 = arith.constant 0 : index
    %c0_68 = arith.constant 0 : index
    %173 = vector.load %arg4[%c4, %c0_67, %c0_68] : memref<8x32x16xf32, #tpu.memory_space<vmem>>, vector<1x32x16xf32>
    %174 = vector.shape_cast %173 : vector<1x32x16xf32> to vector<32x16xf32>
    %175 = arith.truncf %174 : vector<32x16xf32> to vector<32x16xbf16>
    %c4_69 = arith.constant 4 : index
    %c0_70 = arith.constant 0 : index
    %c0_71 = arith.constant 0 : index
    %176 = vector.load %arg5[%c4_69, %c0_70, %c0_71] : memref<8x1x16xf32, #tpu.memory_space<vmem>>, vector<1x1x16xf32>
    %177 = vector.shape_cast %176 : vector<1x1x16xf32> to vector<1x16xf32>
    %178 = arith.truncf %172 : vector<32x16xf32> to vector<32x16xbf16>
    %cst_72 = arith.constant dense<0.000000e+00> : vector<32x16xf32>
    %179 = tpu.matmul %1, %178, %cst_72 {dimension_numbers = #tpu.dot_dimension_numbers<[1], [0], [0], [1], [0, 0, 1, 1], [], []>} : vector<32x32xbf16>, vector<32x16xbf16>, vector<32x16xf32> -> vector<32x16xf32>
    %180 = tpu.concatenate %172, %179 in 1 : vector<32x16xf32>, vector<32x16xf32> -> vector<32x32xf32>
    %181 = arith.truncf %180 : vector<32x32xf32> to vector<32x32xbf16>
    %cst_73 = arith.constant dense<0.000000e+00> : vector<32x16xf32>
    %182 = tpu.matmul %181, %175, %cst_73 {dimension_numbers = #tpu.dot_dimension_numbers<[1], [0], [0], [1], [0, 0, 1, 1], [], []>} : vector<32x32xbf16>, vector<32x16xbf16>, vector<32x16xf32> -> vector<32x16xf32>
    %183 = vector.broadcast %177 : vector<1x16xf32> to vector<32x16xf32>
    %184 = arith.addf %182, %183 : vector<32x16xf32>
    %185 = vector.shape_cast %184 : vector<32x16xf32> to vector<2x16x16xf32>
    %cst_74 = arith.constant dense<0.000000e+00> : vector<16xf32>
    %186 = vector.multi_reduction <add>, %185, %cst_74 [0, 2] : vector<2x16x16xf32> to vector<16xf32>
    %187 = vector.shape_cast %186 : vector<16xf32> to vector<1x16x1xf32>
    %188 = arith.mulf %185, %185 : vector<2x16x16xf32>
    %cst_75 = arith.constant dense<0.000000e+00> : vector<16xf32>
    %189 = vector.multi_reduction <add>, %188, %cst_75 [0, 2] : vector<2x16x16xf32> to vector<16xf32>
    %190 = vector.shape_cast %189 : vector<16xf32> to vector<1x16x1xf32>
    %cst_76 = arith.constant 3.125000e-02 : f32
    %191 = vector.broadcast %cst_76 : f32 to vector<1x16x1xf32>
    %192 = arith.mulf %187, %191 : vector<1x16x1xf32>
    %cst_77 = arith.constant 3.125000e-02 : f32
    %193 = vector.broadcast %cst_77 : f32 to vector<1x16x1xf32>
    %194 = arith.mulf %190, %193 : vector<1x16x1xf32>
    %195 = arith.mulf %192, %192 : vector<1x16x1xf32>
    %196 = arith.subf %194, %195 : vector<1x16x1xf32>
    %197 = vector.broadcast %192 : vector<1x16x1xf32> to vector<2x16x16xf32>
    %198 = arith.subf %185, %197 : vector<2x16x16xf32>
    %cst_78 = arith.constant 9.99999974E-6 : f32
    %199 = vector.broadcast %cst_78 : f32 to vector<1x16x1xf32>
    %200 = arith.addf %196, %199 : vector<1x16x1xf32>
    %201 = math.rsqrt %200 : vector<1x16x1xf32>
    %202 = vector.broadcast %201 : vector<1x16x1xf32> to vector<2x16x16xf32>
    %203 = arith.mulf %198, %202 : vector<2x16x16xf32>
    %cst_79 = arith.constant 0.000000e+00 : f32
    %204 = vector.broadcast %cst_79 : f32 to vector<2x16x16xf32>
    %205 = arith.maximumf %203, %204 : vector<2x16x16xf32>
    %206 = vector.shape_cast %205 : vector<2x16x16xf32> to vector<32x16xf32>
    %c5 = arith.constant 5 : index
    %c0_80 = arith.constant 0 : index
    %c0_81 = arith.constant 0 : index
    %207 = vector.load %arg4[%c5, %c0_80, %c0_81] : memref<8x32x16xf32, #tpu.memory_space<vmem>>, vector<1x32x16xf32>
    %208 = vector.shape_cast %207 : vector<1x32x16xf32> to vector<32x16xf32>
    %209 = arith.truncf %208 : vector<32x16xf32> to vector<32x16xbf16>
    %c5_82 = arith.constant 5 : index
    %c0_83 = arith.constant 0 : index
    %c0_84 = arith.constant 0 : index
    %210 = vector.load %arg5[%c5_82, %c0_83, %c0_84] : memref<8x1x16xf32, #tpu.memory_space<vmem>>, vector<1x1x16xf32>
    %211 = vector.shape_cast %210 : vector<1x1x16xf32> to vector<1x16xf32>
    %212 = arith.truncf %206 : vector<32x16xf32> to vector<32x16xbf16>
    %cst_85 = arith.constant dense<0.000000e+00> : vector<32x16xf32>
    %213 = tpu.matmul %1, %212, %cst_85 {dimension_numbers = #tpu.dot_dimension_numbers<[1], [0], [0], [1], [0, 0, 1, 1], [], []>} : vector<32x32xbf16>, vector<32x16xbf16>, vector<32x16xf32> -> vector<32x16xf32>
    %214 = tpu.concatenate %206, %213 in 1 : vector<32x16xf32>, vector<32x16xf32> -> vector<32x32xf32>
    %215 = arith.truncf %214 : vector<32x32xf32> to vector<32x32xbf16>
    %cst_86 = arith.constant dense<0.000000e+00> : vector<32x16xf32>
    %216 = tpu.matmul %215, %209, %cst_86 {dimension_numbers = #tpu.dot_dimension_numbers<[1], [0], [0], [1], [0, 0, 1, 1], [], []>} : vector<32x32xbf16>, vector<32x16xbf16>, vector<32x16xf32> -> vector<32x16xf32>
    %217 = vector.broadcast %211 : vector<1x16xf32> to vector<32x16xf32>
    %218 = arith.addf %216, %217 : vector<32x16xf32>
    %219 = vector.shape_cast %218 : vector<32x16xf32> to vector<2x16x16xf32>
    %cst_87 = arith.constant dense<0.000000e+00> : vector<16xf32>
    %220 = vector.multi_reduction <add>, %219, %cst_87 [0, 2] : vector<2x16x16xf32> to vector<16xf32>
    %221 = vector.shape_cast %220 : vector<16xf32> to vector<1x16x1xf32>
    %222 = arith.mulf %219, %219 : vector<2x16x16xf32>
    %cst_88 = arith.constant dense<0.000000e+00> : vector<16xf32>
    %223 = vector.multi_reduction <add>, %222, %cst_88 [0, 2] : vector<2x16x16xf32> to vector<16xf32>
    %224 = vector.shape_cast %223 : vector<16xf32> to vector<1x16x1xf32>
    %cst_89 = arith.constant 3.125000e-02 : f32
    %225 = vector.broadcast %cst_89 : f32 to vector<1x16x1xf32>
    %226 = arith.mulf %221, %225 : vector<1x16x1xf32>
    %cst_90 = arith.constant 3.125000e-02 : f32
    %227 = vector.broadcast %cst_90 : f32 to vector<1x16x1xf32>
    %228 = arith.mulf %224, %227 : vector<1x16x1xf32>
    %229 = arith.mulf %226, %226 : vector<1x16x1xf32>
    %230 = arith.subf %228, %229 : vector<1x16x1xf32>
    %231 = vector.broadcast %226 : vector<1x16x1xf32> to vector<2x16x16xf32>
    %232 = arith.subf %219, %231 : vector<2x16x16xf32>
    %cst_91 = arith.constant 9.99999974E-6 : f32
    %233 = vector.broadcast %cst_91 : f32 to vector<1x16x1xf32>
    %234 = arith.addf %230, %233 : vector<1x16x1xf32>
    %235 = math.rsqrt %234 : vector<1x16x1xf32>
    %236 = vector.broadcast %235 : vector<1x16x1xf32> to vector<2x16x16xf32>
    %237 = arith.mulf %232, %236 : vector<2x16x16xf32>
    %cst_92 = arith.constant 0.000000e+00 : f32
    %238 = vector.broadcast %cst_92 : f32 to vector<2x16x16xf32>
    %239 = arith.maximumf %237, %238 : vector<2x16x16xf32>
    %240 = vector.shape_cast %239 : vector<2x16x16xf32> to vector<32x16xf32>
    %241 = arith.addf %172, %240 : vector<32x16xf32>
    %c6 = arith.constant 6 : index
    %c0_93 = arith.constant 0 : index
    %c0_94 = arith.constant 0 : index
    %242 = vector.load %arg4[%c6, %c0_93, %c0_94] : memref<8x32x16xf32, #tpu.memory_space<vmem>>, vector<1x32x16xf32>
    %243 = vector.shape_cast %242 : vector<1x32x16xf32> to vector<32x16xf32>
    %244 = arith.truncf %243 : vector<32x16xf32> to vector<32x16xbf16>
    %c6_95 = arith.constant 6 : index
    %c0_96 = arith.constant 0 : index
    %c0_97 = arith.constant 0 : index
    %245 = vector.load %arg5[%c6_95, %c0_96, %c0_97] : memref<8x1x16xf32, #tpu.memory_space<vmem>>, vector<1x1x16xf32>
    %246 = vector.shape_cast %245 : vector<1x1x16xf32> to vector<1x16xf32>
    %247 = arith.truncf %241 : vector<32x16xf32> to vector<32x16xbf16>
    %cst_98 = arith.constant dense<0.000000e+00> : vector<32x16xf32>
    %248 = tpu.matmul %1, %247, %cst_98 {dimension_numbers = #tpu.dot_dimension_numbers<[1], [0], [0], [1], [0, 0, 1, 1], [], []>} : vector<32x32xbf16>, vector<32x16xbf16>, vector<32x16xf32> -> vector<32x16xf32>
    %249 = tpu.concatenate %241, %248 in 1 : vector<32x16xf32>, vector<32x16xf32> -> vector<32x32xf32>
    %250 = arith.truncf %249 : vector<32x32xf32> to vector<32x32xbf16>
    %cst_99 = arith.constant dense<0.000000e+00> : vector<32x16xf32>
    %251 = tpu.matmul %250, %244, %cst_99 {dimension_numbers = #tpu.dot_dimension_numbers<[1], [0], [0], [1], [0, 0, 1, 1], [], []>} : vector<32x32xbf16>, vector<32x16xbf16>, vector<32x16xf32> -> vector<32x16xf32>
    %252 = vector.broadcast %246 : vector<1x16xf32> to vector<32x16xf32>
    %253 = arith.addf %251, %252 : vector<32x16xf32>
    %254 = vector.shape_cast %253 : vector<32x16xf32> to vector<2x16x16xf32>
    %cst_100 = arith.constant dense<0.000000e+00> : vector<16xf32>
    %255 = vector.multi_reduction <add>, %254, %cst_100 [0, 2] : vector<2x16x16xf32> to vector<16xf32>
    %256 = vector.shape_cast %255 : vector<16xf32> to vector<1x16x1xf32>
    %257 = arith.mulf %254, %254 : vector<2x16x16xf32>
    %cst_101 = arith.constant dense<0.000000e+00> : vector<16xf32>
    %258 = vector.multi_reduction <add>, %257, %cst_101 [0, 2] : vector<2x16x16xf32> to vector<16xf32>
    %259 = vector.shape_cast %258 : vector<16xf32> to vector<1x16x1xf32>
    %cst_102 = arith.constant 3.125000e-02 : f32
    %260 = vector.broadcast %cst_102 : f32 to vector<1x16x1xf32>
    %261 = arith.mulf %256, %260 : vector<1x16x1xf32>
    %cst_103 = arith.constant 3.125000e-02 : f32
    %262 = vector.broadcast %cst_103 : f32 to vector<1x16x1xf32>
    %263 = arith.mulf %259, %262 : vector<1x16x1xf32>
    %264 = arith.mulf %261, %261 : vector<1x16x1xf32>
    %265 = arith.subf %263, %264 : vector<1x16x1xf32>
    %266 = vector.broadcast %261 : vector<1x16x1xf32> to vector<2x16x16xf32>
    %267 = arith.subf %254, %266 : vector<2x16x16xf32>
    %cst_104 = arith.constant 9.99999974E-6 : f32
    %268 = vector.broadcast %cst_104 : f32 to vector<1x16x1xf32>
    %269 = arith.addf %265, %268 : vector<1x16x1xf32>
    %270 = math.rsqrt %269 : vector<1x16x1xf32>
    %271 = vector.broadcast %270 : vector<1x16x1xf32> to vector<2x16x16xf32>
    %272 = arith.mulf %267, %271 : vector<2x16x16xf32>
    %cst_105 = arith.constant 0.000000e+00 : f32
    %273 = vector.broadcast %cst_105 : f32 to vector<2x16x16xf32>
    %274 = arith.maximumf %272, %273 : vector<2x16x16xf32>
    %275 = vector.shape_cast %274 : vector<2x16x16xf32> to vector<32x16xf32>
    %c7 = arith.constant 7 : index
    %c0_106 = arith.constant 0 : index
    %c0_107 = arith.constant 0 : index
    %276 = vector.load %arg4[%c7, %c0_106, %c0_107] : memref<8x32x16xf32, #tpu.memory_space<vmem>>, vector<1x32x16xf32>
    %277 = vector.shape_cast %276 : vector<1x32x16xf32> to vector<32x16xf32>
    %278 = arith.truncf %277 : vector<32x16xf32> to vector<32x16xbf16>
    %c7_108 = arith.constant 7 : index
    %c0_109 = arith.constant 0 : index
    %c0_110 = arith.constant 0 : index
    %279 = vector.load %arg5[%c7_108, %c0_109, %c0_110] : memref<8x1x16xf32, #tpu.memory_space<vmem>>, vector<1x1x16xf32>
    %280 = vector.shape_cast %279 : vector<1x1x16xf32> to vector<1x16xf32>
    %281 = arith.truncf %275 : vector<32x16xf32> to vector<32x16xbf16>
    %cst_111 = arith.constant dense<0.000000e+00> : vector<32x16xf32>
    %282 = tpu.matmul %1, %281, %cst_111 {dimension_numbers = #tpu.dot_dimension_numbers<[1], [0], [0], [1], [0, 0, 1, 1], [], []>} : vector<32x32xbf16>, vector<32x16xbf16>, vector<32x16xf32> -> vector<32x16xf32>
    %283 = tpu.concatenate %275, %282 in 1 : vector<32x16xf32>, vector<32x16xf32> -> vector<32x32xf32>
    %284 = arith.truncf %283 : vector<32x32xf32> to vector<32x32xbf16>
    %cst_112 = arith.constant dense<0.000000e+00> : vector<32x16xf32>
    %285 = tpu.matmul %284, %278, %cst_112 {dimension_numbers = #tpu.dot_dimension_numbers<[1], [0], [0], [1], [0, 0, 1, 1], [], []>} : vector<32x32xbf16>, vector<32x16xbf16>, vector<32x16xf32> -> vector<32x16xf32>
    %286 = vector.broadcast %280 : vector<1x16xf32> to vector<32x16xf32>
    %287 = arith.addf %285, %286 : vector<32x16xf32>
    %288 = vector.shape_cast %287 : vector<32x16xf32> to vector<2x16x16xf32>
    %cst_113 = arith.constant dense<0.000000e+00> : vector<16xf32>
    %289 = vector.multi_reduction <add>, %288, %cst_113 [0, 2] : vector<2x16x16xf32> to vector<16xf32>
    %290 = vector.shape_cast %289 : vector<16xf32> to vector<1x16x1xf32>
    %291 = arith.mulf %288, %288 : vector<2x16x16xf32>
    %cst_114 = arith.constant dense<0.000000e+00> : vector<16xf32>
    %292 = vector.multi_reduction <add>, %291, %cst_114 [0, 2] : vector<2x16x16xf32> to vector<16xf32>
    %293 = vector.shape_cast %292 : vector<16xf32> to vector<1x16x1xf32>
    %cst_115 = arith.constant 3.125000e-02 : f32
    %294 = vector.broadcast %cst_115 : f32 to vector<1x16x1xf32>
    %295 = arith.mulf %290, %294 : vector<1x16x1xf32>
    %cst_116 = arith.constant 3.125000e-02 : f32
    %296 = vector.broadcast %cst_116 : f32 to vector<1x16x1xf32>
    %297 = arith.mulf %293, %296 : vector<1x16x1xf32>
    %298 = arith.mulf %295, %295 : vector<1x16x1xf32>
    %299 = arith.subf %297, %298 : vector<1x16x1xf32>
    %300 = vector.broadcast %295 : vector<1x16x1xf32> to vector<2x16x16xf32>
    %301 = arith.subf %288, %300 : vector<2x16x16xf32>
    %cst_117 = arith.constant 9.99999974E-6 : f32
    %302 = vector.broadcast %cst_117 : f32 to vector<1x16x1xf32>
    %303 = arith.addf %299, %302 : vector<1x16x1xf32>
    %304 = math.rsqrt %303 : vector<1x16x1xf32>
    %305 = vector.broadcast %304 : vector<1x16x1xf32> to vector<2x16x16xf32>
    %306 = arith.mulf %301, %305 : vector<2x16x16xf32>
    %cst_118 = arith.constant 0.000000e+00 : f32
    %307 = vector.broadcast %cst_118 : f32 to vector<2x16x16xf32>
    %308 = arith.maximumf %306, %307 : vector<2x16x16xf32>
    %309 = vector.shape_cast %308 : vector<2x16x16xf32> to vector<32x16xf32>
    %310 = arith.addf %241, %309 : vector<32x16xf32>
    %c0_119 = arith.constant 0 : index
    %c0_120 = arith.constant 0 : index
    %311 = vector.load %arg6[%c0_119, %c0_120] : memref<32x3xf32, #tpu.memory_space<vmem>>, vector<32x3xf32>
    %312 = arith.truncf %311 : vector<32x3xf32> to vector<32x3xbf16>
    %c0_121 = arith.constant 0 : index
    %c0_122 = arith.constant 0 : index
    %313 = vector.load %arg7[%c0_121, %c0_122] : memref<1x3xf32, #tpu.memory_space<vmem>>, vector<1x3xf32>
    %314 = arith.truncf %310 : vector<32x16xf32> to vector<32x16xbf16>
    %cst_123 = arith.constant dense<0.000000e+00> : vector<32x16xf32>
    %315 = tpu.matmul %1, %314, %cst_123 {dimension_numbers = #tpu.dot_dimension_numbers<[1], [0], [0], [1], [0, 0, 1, 1], [], []>} : vector<32x32xbf16>, vector<32x16xbf16>, vector<32x16xf32> -> vector<32x16xf32>
    %316 = tpu.concatenate %310, %315 in 1 : vector<32x16xf32>, vector<32x16xf32> -> vector<32x32xf32>
    %317 = arith.truncf %316 : vector<32x32xf32> to vector<32x32xbf16>
    %cst_124 = arith.constant dense<0.000000e+00> : vector<32x3xf32>
    %318 = tpu.matmul %317, %312, %cst_124 {dimension_numbers = #tpu.dot_dimension_numbers<[1], [0], [0], [1], [0, 0, 1, 1], [], []>} : vector<32x32xbf16>, vector<32x3xbf16>, vector<32x3xf32> -> vector<32x3xf32>
    %319 = vector.broadcast %313 : vector<1x3xf32> to vector<32x3xf32>
    %320 = arith.addf %318, %319 : vector<32x3xf32>
    %c0_125 = arith.constant 0 : index
    %c0_126 = arith.constant 0 : index
    %321 = vector.load %arg8[%c0_125, %c0_126] : memref<32x3xf32, #tpu.memory_space<vmem>>, vector<32x3xf32>
    tpu.vector_store %arg8[%c0_125, %c0_126], %320 {strides = array<i32>} : memref<32x3xf32, #tpu.memory_space<vmem>>, vector<32x3xf32>,
    return
  }
}

</mosaic_0001>

<bundles_post_ra>
// kernel: semgcn_equiv_forward.1
= control target key start
LH: loop header
LB: loop body
LE: loop exit
PB: predicated region body
PF: predicated region fallthrough
CT: control target
= control target key end

     0   :  { %vm45_vm0 = vcmask 261120   ;;  %vm137_vm1 = vcmask 1041408   ;;  %vm117_vm2 = vcmask 15360   ;;  %vm130_vm3 = vcmask 31744   ;;  %s2393_s30 = smov 16   ;;  %s2884_s0 = inlined_call_operand.vmem [shape: f32[32,2], index: 0, kind: input, shape index: {}]   ;;  %s2885_s1 = inlined_call_operand.vmem [shape: f32[32,32], index: 1, kind: input, shape index: {}]   ;;  %s2886_s2 = inlined_call_operand.vmem [shape: f32[4,16], index: 2, kind: input, shape index: {}]   ;;  %s2887_s3 = inlined_call_operand.vmem [shape: f32[1,16], index: 3, kind: input, shape index: {}]   ;;  %s2888_s4 = inlined_call_operand.vmem [shape: f32[8,32,16], index: 4, kind: input, shape index: {}]   ;;  %s2889_s5 = inlined_call_operand.vmem [shape: f32[8,1,16], index: 5, kind: input, shape index: {}]   ;;  %s2890_s6 = inlined_call_operand.vmem [shape: f32[32,3], index: 6, kind: input, shape index: {}]   ;;  %s2891_s7 = inlined_call_operand.vmem [shape: f32[1,3], index: 7, kind: input, shape index: {}]   ;;  %s2892_s8 = inlined_call_operand.vmem [shape: f32[32,3], index: 8, kind: output, shape index: {}]  }
   0x1   :  { %v36_v0 = vld [vmem:[%s2884_s0] sm:$0xff]  ;;  %v37_v1 = vld [vmem:[%s2884_s0 + $0x8] sm:$0xff]  ;;  %v38_v2 = vld [vmem:[%s2884_s0 + $0x10] sm:$0xff]  ;;  %vm190_vm4 = vcmask 130048   ;;  %vm1922_vm5 = vcmask 23552  }
   0x2   :  { %v43_v3 = vpack.c.bf16 %v37_v1, %v36_v0  ;;  %v39_v4 = vld [vmem:[%s2884_s0 + $0x18] sm:$0xff]  ;;  %v30_v5 = vld [vmem:[%s2885_s1] sm:$0xff]  ;;  %v31_v6 = vld [vmem:[%s2885_s1 + $0x8] sm:$0xff] }
   0x3   :  { %v44_v7 = vpack.c.bf16 %v39_v4, %v38_v2  ;;  %v2457_v8 = vpack.c.bf16 %v31_v6, %v30_v5  ;;  %v32_v9 = vld [vmem:[%s2885_s1 + $0x10] sm:$0xff]  ;;  %v33_v10 = vld [vmem:[%s2885_s1 + $0x18] sm:$0xff]  ;;  %v40_v12 = vld [vmem:[%s2886_s2] sm:$0xf]  ;;  %s2392_s1 = smov 2  }
   0x4   :  { %2095 = vmatprep.subr.bf16.mxu0 %v43_v3  ;;  %v2467_v11 = vpack.c.bf16 %v33_v10, %v32_v9  ;;  %v41_v13 = vpack.c.bf16 %v40_v12, %v40_v12  ;;  %v1933_v33 = vld [vmem:[%s2887_s3] ss:$0 sm:$0xff] }
   0x5   :  { %2096 = vmatpush3.bf16.msra.mxu0 %v43_v3  ;;  %2099 = vmatprep.mubr.msk.bf16.mxu0 %vm45_vm0, %v2457_v8 }
   0x6   :  { %2097 = vmatprep.subr.bf16.mxu0 %v44_v7  ;;  %2253 = vmatprep.subr.msk.bf16.mxu1 %vm137_vm1, %v41_v13  ;;  %v139_v14 = vsel %vm137_vm1, %v41_v13, 0 }
   0x7   :  { %2104 = vmatpush3.bf16.msra.mxu1 %v139_v14 }
   0x9   :  { %2098 = vmatpush3.bf16.msra.mxu0 %v44_v7 }
   0xc   :  { %2100 = vmatmul.mubr.msk.bf16.vlgmr.msra.gmra.mrb[0].mxu0 %vm45_vm0, %v2467_v11 }
  0xdf   :  { %v2101_v15 = vpop.f32.mrb[0].mxu0 }
  0xe0   :  { %v86_v16 = vpop.f32.mrb[1].mxu0 }
  0xe1   :  { %v2102_v17 = vpop.f32.mrb[2].mxu0 }
  0xe2   :  { %v2261_v18 = vpack.i.bf16 %v2102_v17, %v2101_v15  ;;  %v89_v19 = vpop.f32.mrb[3].mxu0 }
  0xe3   :  { %v2256_v20 = vpack.i.bf16 %v89_v19, %v86_v16 }
  0xe5   :  { %2257 = vrot.lane.b32.xlu0 %v2256_v20, %s2392_s1 }
  0xe9   :  { %2262 = vrot.lane.b32.xlu0 %v2261_v18, %s2392_s1 }
 0x157   :  { %v2258_v21 = vpop.permute.xlu0 %2257 }
 0x158   :  { %v2260_v22 = vunpack.i.h.bf16 %v2258_v21  ;;  %v2259_v23 = vunpack.i.l.bf16 %v2258_v21 }
 0x15a   :  { %v118_v24 = vsel %vm117_vm2, %v36_v0, %v2259_v23  ;;  %v119_v25 = vsel %vm117_vm2, %v37_v1, %v2260_v22 }
 0x15b   :  { %v2263_v26 = vpop.permute.xlu0 %2262  ;;  %v122_v27 = vpack.c.bf16 %v119_v25, %v118_v24 }
 0x15c   :  { %v2265_v28 = vunpack.i.h.bf16 %v2263_v26  ;;  %v2264_v29 = vunpack.i.l.bf16 %v2263_v26  ;;  %v239_v26 = vld [vmem:[%s2888_s4] sm:$0xff] }
 0x15d   :  { %2105 = vmatprep.mubr.msk.bf16.mxu1 %vm130_vm3, %v122_v27  ;;  %v240_v27 = vld [vmem:[%s2888_s4 + $0x8] sm:$0xff] }
 0x15e   :  { %v121_v30 = vsel %vm117_vm2, %v39_v4, %v2265_v28  ;;  %v120_v31 = vsel %vm117_vm2, %v38_v2, %v2264_v29  ;;  %v243_v28 = vpack.c.bf16 %v240_v27, %v239_v26  ;;  %v241_v29 = vld [vmem:[%s2888_s4 + $0x10] sm:$0xff] }
 0x15f   :  { %v123_v32 = vpack.c.bf16 %v121_v30, %v120_v31  ;;  %v242_v30 = vld [vmem:[%s2888_s4 + $0x18] sm:$0xff] }
 0x160   :  { %2117 = vmatprep.subr.bf16.mxu0 %v243_v28  ;;  %v244_v31 = vpack.c.bf16 %v242_v30, %v241_v29 }
 0x161   :  { %2106 = vmatmul.mubr.msk.bf16.vlgmr.msra.gmra.mrb[0].mxu1 %vm130_vm3, %v123_v32  ;;  %2118 = vmatpush3.bf16.msra.mxu0 %v243_v28 }
 0x162   :  { %2113 = vmatprep.mubr.msk.bf16.mxu1 %vm45_vm0, %v2457_v8  ;;  %2119 = vmatprep.subr.bf16.mxu0 %v244_v31 }
 0x165   :  { %2120 = vmatpush3.bf16.msra.mxu0 %v244_v31 }
 0x234   :  { %v2107_v34 = vpop.f32.mrb[0].mxu1 }
 0x235   :  { %v184_v35 = vadd.f32 %v2107_v34, %v1933_v33  ;;  %v175_v36 = vpop.f32.mrb[1].mxu1 }
 0x236   :  { %v176_v37 = vadd.f32 %v1933_v33, %v175_v36  ;;  %v2108_v38 = vpop.f32.mrb[2].mxu1 }
 0x237   :  { %v187_v39 = vadd.f32 %v2108_v38, %v1933_v33  ;;  %v178_v40 = vpop.f32.mrb[3].mxu1  ;;  %v192_v41 = vsel %vm190_vm4, %v184_v35, 0.0  ;;  %v203_v42 = vmul.f32 %v184_v35, %v184_v35 }
 0x238   :  { %v179_v43 = vadd.f32 %v1933_v33, %v178_v40  ;;  %v191_v44 = vsel %vm190_vm4, %v176_v37, 0.0  ;;  %v201_v45 = vmul.f32 %v176_v37, %v176_v37 }
 0x239   :  { %v193_v46 = vadd.f32 %v192_v41, %v191_v44  ;;  %v206_v47 = vsel %vm190_vm4, %v203_v42, 0.0  ;;  %v197_v48 = vsel %vm190_vm4, %v187_v39, 0.0  ;;  %v204_v52 = vmul.f32 %v187_v39, %v187_v39 }
 0x23a   :  { %v205_v49 = vsel %vm190_vm4, %v201_v45, 0.0  ;;  %v196_v50 = vsel %vm190_vm4, %v179_v43, 0.0  ;;  %v202_v51 = vmul.f32 %v179_v43, %v179_v43 }
 0x23b   :  { %194 = vadd.xlane.f32.xlu1 %v193_v46  ;;  %v207_v53 = vadd.f32 %v206_v47, %v205_v49  ;;  %v198_v54 = vadd.f32 %v197_v48, %v196_v50  ;;  %v211_v56 = vsel %vm190_vm4, %v204_v52, 0.0  ;;  %v1938_v50 = vld [vmem:[%s2889_s5] ss:$0 sm:$0xff] }
 0x23c   :  { %v210_v55 = vsel %vm190_vm4, %v202_v51, 0.0 }
 0x23d   :  { %208 = vadd.xlane.f32.xlu0 %v207_v53  ;;  %v212_v57 = vadd.f32 %v211_v56, %v210_v55 }
 0x23f   :  { %199 = vadd.xlane.f32.xlu1 %v198_v54 }
 0x243   :  { %213 = vadd.xlane.f32.xlu1 %v212_v57 }
 0x2c8   :  { %v195_v58 = vpop.xlane.xlu1 %194 }
 0x2c9   :  { %v215_v59 = vmul.f32 0.03125, %v195_v58 }
 0x2ca   :  { %v209_v60 = vpop.xlane.xlu0 %208 }
 0x2cb   :  { %v217_v61 = vmul.f32 0.03125, %v209_v60  ;;  %v219_v62 = vmul.f32 %v215_v59, %v215_v59  ;;  %v223_v10 = vsub.f32 %v176_v37, %v215_v59  ;;  %v225_v12 = vsub.f32 %v184_v35, %v215_v59 }
 0x2cc   :  { %v200_v63 = vpop.xlane.xlu1 %199 }
 0x2cd   :  { %v221_v0 = vsub.f32 %v217_v61, %v219_v62  ;;  %v216_v1 = vmul.f32 0.03125, %v200_v63 }
 0x2cf   :  { %v227_v2 = vadd.f32 1e-05, %v221_v0  ;;  %v220_v4 = vmul.f32 %v216_v1, %v216_v1  ;;  %v224_v13 = vsub.f32 %v179_v43, %v216_v1  ;;  %v226_v14 = vsub.f32 %v187_v39, %v216_v1 }
 0x2d0   :  { %v214_v3 = vpop.xlane.xlu1 %213 }
 0x2d1   :  { %v218_v5 = vmul.f32 0.03125, %v214_v3  ;;  %2356 = vrsqrt.f32 %v227_v2 }
 0x2d3   :  { %v222_v6 = vsub.f32 %v218_v5, %v220_v4 }
 0x2d5   :  { %v228_v7 = vadd.f32 1e-05, %v222_v6 }
 0x2d7   :  { %2358 = vrsqrt.f32 %v228_v7 }
 0x2db   :  { %v2357_v9 = vpop.eup %2356 }
 0x2dc   :  { %v231_v15 = vmul.f32 %v2357_v9, %v223_v10  ;;  %v233_v18 = vmul.f32 %v2357_v9, %v225_v12 }
 0x2de   :  { %v2487_v20 = vmax.f32 %v231_v15, 0.0  ;;  %v2495_v24 = vmax.f32 %v233_v18, 0.0 }
 0x2e1   :  { %v2359_v16 = vpop.eup %2358 }
 0x2e2   :  { %v232_v17 = vmul.f32 %v2359_v16, %v224_v13  ;;  %v234_v19 = vmul.f32 %v2359_v16, %v226_v14 }
 0x2e4   :  { %v2489_v21 = vmax.f32 %v232_v17, 0.0  ;;  %v2491_v22 = vmax.f32 %v234_v19, 0.0 }
 0x2e6   :  { %v246_v23 = vpack.c.bf16 %v2489_v21, %v2487_v20  ;;  %v247_v25 = vpack.c.bf16 %v2491_v22, %v2495_v24 }
 0x2e8   :  { %2109 = vmatprep.subr.bf16.mxu1 %v246_v23 }
 0x2e9   :  { %2110 = vmatpush3.bf16.msra.mxu1 %v246_v23 }
 0x2ea   :  { %2111 = vmatprep.subr.bf16.mxu1 %v247_v25 }
 0x2ed   :  { %2112 = vmatpush3.bf16.msra.mxu1 %v247_v25 }
 0x2f0   :  { %2114 = vmatmul.mubr.msk.bf16.vlgmr.msra.gmra.mrb[4].mxu1 %vm45_vm0, %v2467_v11 }
 0x2f1   :  { %2129 = vmatprep.mubr.msk.bf16.mxu1 %vm45_vm0, %v2457_v8 }
 0x3c3   :  { %v2115_v32 = vpop.f32.mrb[4].mxu1 }
 0x3c4   :  { %v282_v33 = vpop.f32.mrb[5].mxu1 }
 0x3c5   :  { %v2116_v34 = vpop.f32.mrb[6].mxu1 }
 0x3c6   :  { %v2271_v35 = vpack.i.bf16 %v2116_v34, %v2115_v32  ;;  %v285_v36 = vpop.f32.mrb[7].mxu1 }
 0x3c7   :  { %v2266_v37 = vpack.i.bf16 %v285_v36, %v282_v33 }
 0x3c9   :  { %2267 = vrot.lane.b32.xlu1 %v2266_v37, %s2393_s30 }
 0x3cd   :  { %2272 = vrot.lane.b32.xlu1 %v2271_v35, %s2393_s30 }
 0x43b   :  { %v2268_v38 = vpop.permute.xlu1 %2267 }
 0x43c   :  { %v2270_v39 = vunpack.i.h.bf16 %v2268_v38  ;;  %v2269_v40 = vunpack.i.l.bf16 %v2268_v38 }
 0x43e   :  { %v314_v41 = vsel %vm190_vm4, %v2489_v21, %v2270_v39  ;;  %v313_v42 = vsel %vm190_vm4, %v2487_v20, %v2269_v40 }
 0x43f   :  { %v317_v43 = vpack.c.bf16 %v314_v41, %v313_v42  ;;  %v2273_v44 = vpop.permute.xlu1 %2272 }
 0x440   :  { %v2275_v45 = vunpack.i.h.bf16 %v2273_v44  ;;  %v2274_v46 = vunpack.i.l.bf16 %v2273_v44 }
 0x441   :  { %2121 = vmatprep.mubr.msk.bf16.mxu0 %vm45_vm0, %v317_v43 }
 0x442   :  { %v316_v47 = vsel %vm190_vm4, %v2491_v22, %v2275_v45  ;;  %v315_v48 = vsel %vm190_vm4, %v2495_v24, %v2274_v46 }
 0x443   :  { %v318_v49 = vpack.c.bf16 %v316_v47, %v315_v48  ;;  %v1941_v47 = vld [vmem:[%s2888_s4 + $0x20] sm:$0xff]  ;;  %v1942_v48 = vld [vmem:[%s2888_s4 + $0x28] sm:$0xff] }
 0x445   :  { %2122 = vmatmul.mubr.msk.bf16.vlgmr.msra.gmra.mrb[4].mxu0 %vm45_vm0, %v318_v49  ;;  %v433_v49 = vpack.c.bf16 %v1942_v48, %v1941_v47 }
 0x447   :  { %2133 = vmatprep.subr.bf16.mxu0 %v433_v49 }
 0x448   :  { %2134 = vmatpush3.bf16.msra.mxu0 %v433_v49 }
 0x518   :  { %v2123_v51 = vpop.f32.mrb[4].mxu0 }
 0x519   :  { %v374_v52 = vadd.f32 %v2123_v51, %v1938_v50  ;;  %v365_v53 = vpop.f32.mrb[5].mxu0  ;;  %v1944_v51 = vld [vmem:[%s2888_s4 + $0x38] sm:$0xff] }
 0x51a   :  { %v366_v54 = vadd.f32 %v1938_v50, %v365_v53  ;;  %v2124_v55 = vpop.f32.mrb[6].mxu0 }
 0x51b   :  { %v377_v56 = vadd.f32 %v2124_v55, %v1938_v50  ;;  %v368_v57 = vpop.f32.mrb[7].mxu0  ;;  %v381_v58 = vsel %vm190_vm4, %v374_v52, 0.0  ;;  %v392_v62 = vmul.f32 %v374_v52, %v374_v52 }
 0x51c   :  { %v369_v59 = vadd.f32 %v1938_v50, %v368_v57  ;;  %v380_v60 = vsel %vm190_vm4, %v366_v54, 0.0  ;;  %v390_v61 = vmul.f32 %v366_v54, %v366_v54  ;;  %v1943_v50 = vld [vmem:[%s2888_s4 + $0x30] sm:$0xff] }
 0x51d   :  { %v382_v63 = vadd.f32 %v381_v58, %v380_v60  ;;  %v386_v0 = vsel %vm190_vm4, %v377_v56, 0.0  ;;  %v395_v4 = vsel %vm190_vm4, %v392_v62, 0.0  ;;  %v393_v6 = vmul.f32 %v377_v56, %v377_v56 }
 0x51e   :  { %v385_v1 = vsel %vm190_vm4, %v369_v59, 0.0  ;;  %v394_v3 = vsel %vm190_vm4, %v390_v61, 0.0  ;;  %v391_v5 = vmul.f32 %v369_v59, %v369_v59 }
 0x51f   :  { %383 = vadd.xlane.f32.xlu1 %v382_v63  ;;  %v387_v2 = vadd.f32 %v386_v0, %v385_v1  ;;  %v396_v7 = vadd.f32 %v395_v4, %v394_v3  ;;  %v400_v10 = vsel %vm190_vm4, %v393_v6, 0.0 }
 0x520   :  { %v399_v9 = vsel %vm190_vm4, %v391_v5, 0.0 }
 0x521   :  { %388 = vadd.xlane.f32.xlu0 %v387_v2  ;;  %v401_v12 = vadd.f32 %v400_v10, %v399_v9 }
 0x525   :  { %397 = vadd.xlane.f32.xlu0 %v396_v7  ;;  %v1948_v7 = vld [vmem:[%s2889_s5 + $0x1] ss:$0 sm:$0xff] }
 0x529   :  { %402 = vadd.xlane.f32.xlu0 %v401_v12 }
 0x5ac   :  { %v384_v13 = vpop.xlane.xlu1 %383 }
 0x5ad   :  { %v404_v15 = vmul.f32 0.03125, %v384_v13 }
 0x5ae   :  { %v389_v14 = vpop.xlane.xlu0 %388 }
 0x5af   :  { %v405_v17 = vmul.f32 0.03125, %v389_v14  ;;  %v408_v19 = vmul.f32 %v404_v15, %v404_v15  ;;  %v412_v32 = vsub.f32 %v366_v54, %v404_v15  ;;  %v414_v33 = vsub.f32 %v374_v52, %v404_v15 }
 0x5b0   :  { %v434_v52 = vpack.c.bf16 %v1944_v51, %v1943_v50 }
 0x5b1   :  { %v409_v27 = vmul.f32 %v405_v17, %v405_v17  ;;  %v413_v34 = vsub.f32 %v369_v59, %v405_v17  ;;  %v415_v35 = vsub.f32 %v377_v56, %v405_v17 }
 0x5b2   :  { %v398_v16 = vpop.xlane.xlu0 %397  ;;  %2135 = vmatprep.subr.bf16.mxu0 %v434_v52 }
 0x5b3   :  { %v406_v18 = vmul.f32 0.03125, %v398_v16  ;;  %2136 = vmatpush3.bf16.msra.mxu0 %v434_v52 }
 0x5b5   :  { %v410_v23 = vsub.f32 %v406_v18, %v408_v19 }
 0x5b6   :  { %v403_v25 = vpop.xlane.xlu0 %402 }
 0x5b7   :  { %v416_v26 = vadd.f32 1e-05, %v410_v23  ;;  %v407_v28 = vmul.f32 0.03125, %v403_v25 }
 0x5b9   :  { %2360 = vrsqrt.f32 %v416_v26  ;;  %v411_v29 = vsub.f32 %v407_v28, %v409_v27 }
 0x5bb   :  { %v417_v30 = vadd.f32 1e-05, %v411_v29 }
 0x5bd   :  { %2362 = vrsqrt.f32 %v417_v30 }
 0x5c3   :  { %v2361_v31 = vpop.eup %2360 }
 0x5c4   :  { %v420_v36 = vmul.f32 %v2361_v31, %v412_v32  ;;  %v422_v39 = vmul.f32 %v2361_v31, %v414_v33 }
 0x5c6   :  { %v424_v41 = vmax.f32 %v420_v36, 0.0  ;;  %v426_v45 = vmax.f32 %v422_v39, 0.0 }
 0x5c7   :  { %v2363_v37 = vpop.eup %2362 }
 0x5c8   :  { %v421_v38 = vmul.f32 %v2363_v37, %v413_v34  ;;  %v423_v40 = vmul.f32 %v2363_v37, %v415_v35 }
 0x5ca   :  { %v425_v42 = vmax.f32 %v421_v38, 0.0  ;;  %v427_v43 = vmax.f32 %v423_v40, 0.0 }
 0x5cc   :  { %v437_v44 = vpack.c.bf16 %v425_v42, %v424_v41  ;;  %v438_v46 = vpack.c.bf16 %v427_v43, %v426_v45 }
 0x5ce   :  { %2125 = vmatprep.subr.bf16.mxu1 %v437_v44 }
 0x5cf   :  { %2126 = vmatpush3.bf16.msra.mxu1 %v437_v44 }
 0x5d0   :  { %2127 = vmatprep.subr.bf16.mxu1 %v438_v46 }
 0x5d3   :  { %2128 = vmatpush3.bf16.msra.mxu1 %v438_v46 }
 0x5d6   :  { %2130 = vmatmul.mubr.msk.bf16.vlgmr.msra.gmra.mrb[8].mxu1 %vm45_vm0, %v2467_v11 }
 0x5d7   :  { %2145 = vmatprep.mubr.msk.bf16.mxu1 %vm45_vm0, %v2457_v8 }
 0x6a9   :  { %v2131_v53 = vpop.f32.mrb[8].mxu1 }
 0x6aa   :  { %v473_v54 = vpop.f32.mrb[9].mxu1 }
 0x6ab   :  { %v2132_v55 = vpop.f32.mrb[10].mxu1 }
 0x6ac   :  { %v2281_v56 = vpack.i.bf16 %v2132_v55, %v2131_v53  ;;  %v476_v57 = vpop.f32.mrb[11].mxu1 }
 0x6ad   :  { %v2276_v58 = vpack.i.bf16 %v476_v57, %v473_v54 }
 0x6ae   :  { %2282 = vrot.lane.b32.xlu1 %v2281_v56, %s2393_s30 }
 0x6af   :  { %2277 = vrot.lane.b32.xlu0 %v2276_v58, %s2393_s30 }
 0x720   :  { %v2283_v59 = vpop.permute.xlu1 %2282 }
 0x721   :  { %v2285_v60 = vunpack.i.h.bf16 %v2283_v59  ;;  %v2284_v61 = vunpack.i.l.bf16 %v2283_v59  ;;  %v2278_v62 = vpop.permute.xlu0 %2277 }
 0x722   :  { %v2280_v63 = vunpack.i.h.bf16 %v2278_v62  ;;  %v2279_v0 = vunpack.i.l.bf16 %v2278_v62 }
 0x723   :  { %v507_v1 = vsel %vm190_vm4, %v427_v43, %v2285_v60  ;;  %v506_v2 = vsel %vm190_vm4, %v426_v45, %v2284_v61 }
 0x724   :  { %v505_v3 = vsel %vm190_vm4, %v425_v42, %v2280_v63  ;;  %v504_v4 = vsel %vm190_vm4, %v424_v41, %v2279_v0  ;;  %v509_v6 = vpack.c.bf16 %v507_v1, %v506_v2 }
 0x725   :  { %v508_v5 = vpack.c.bf16 %v505_v3, %v504_v4 }
 0x727   :  { %2137 = vmatprep.mubr.msk.bf16.mxu0 %vm45_vm0, %v508_v5 }
 0x728   :  { %2138 = vmatmul.mubr.msk.bf16.vlgmr.msra.gmra.mrb[8].mxu0 %vm45_vm0, %v509_v6 }
 0x7fb   :  { %v2139_v9 = vpop.f32.mrb[8].mxu0 }
 0x7fc   :  { %v565_v10 = vadd.f32 %v2139_v9, %v1948_v7  ;;  %v556_v12 = vpop.f32.mrb[9].mxu0  ;;  %v1954_v9 = vld [vmem:[%s2888_s4 + $0x58] sm:$0xff] }
 0x7fd   :  { %v557_v13 = vadd.f32 %v1948_v7, %v556_v12  ;;  %v2140_v14 = vpop.f32.mrb[10].mxu0 }
 0x7fe   :  { %v568_v15 = vadd.f32 %v2140_v14, %v1948_v7  ;;  %v559_v16 = vpop.f32.mrb[11].mxu0  ;;  %v572_v17 = vsel %vm190_vm4, %v565_v10, 0.0  ;;  %v583_v18 = vmul.f32 %v565_v10, %v565_v10 }
 0x7ff   :  { %v560_v19 = vadd.f32 %v1948_v7, %v559_v16  ;;  %v571_v23 = vsel %vm190_vm4, %v557_v13, 0.0  ;;  %v581_v25 = vmul.f32 %v557_v13, %v557_v13 }
 0x800   :  { %v573_v26 = vadd.f32 %v572_v17, %v571_v23  ;;  %v577_v27 = vsel %vm190_vm4, %v568_v15, 0.0  ;;  %v586_v28 = vsel %vm190_vm4, %v583_v18, 0.0  ;;  %v584_v32 = vmul.f32 %v568_v15, %v568_v15 }
 0x801   :  { %v576_v29 = vsel %vm190_vm4, %v560_v19, 0.0  ;;  %v585_v30 = vsel %vm190_vm4, %v581_v25, 0.0  ;;  %v582_v31 = vmul.f32 %v560_v19, %v560_v19 }
 0x802   :  { %574 = vadd.xlane.f32.xlu0 %v573_v26  ;;  %v578_v33 = vadd.f32 %v577_v27, %v576_v29  ;;  %v587_v34 = vadd.f32 %v586_v28, %v585_v30  ;;  %v591_v36 = vsel %vm190_vm4, %v584_v32, 0.0 }
 0x803   :  { %v590_v35 = vsel %vm190_vm4, %v582_v31, 0.0 }
 0x804   :  { %579 = vadd.xlane.f32.xlu1 %v578_v33  ;;  %v592_v37 = vadd.f32 %v591_v36, %v590_v35 }
 0x806   :  { %588 = vadd.xlane.f32.xlu0 %v587_v34  ;;  %v1958_v34 = vld [vmem:[%s2889_s5 + $0x2] ss:$0 sm:$0xff] }
 0x80a   :  { %593 = vadd.xlane.f32.xlu0 %v592_v37 }
 0x88f   :  { %v575_v38 = vpop.xlane.xlu0 %574 }
 0x890   :  { %v595_v39 = vmul.f32 0.03125, %v575_v38 }
 0x891   :  { %v580_v40 = vpop.xlane.xlu1 %579 }
 0x892   :  { %v596_v42 = vmul.f32 0.03125, %v580_v40  ;;  %v599_v43 = vmul.f32 %v595_v39, %v595_v39  ;;  %v603_v52 = vsub.f32 %v557_v13, %v595_v39  ;;  %v605_v54 = vsub.f32 %v565_v10, %v595_v39 }
 0x893   :  { %v589_v41 = vpop.xlane.xlu0 %588 }
 0x894   :  { %v597_v44 = vmul.f32 0.03125, %v589_v41  ;;  %v600_v48 = vmul.f32 %v596_v42, %v596_v42  ;;  %v604_v56 = vsub.f32 %v560_v19, %v596_v42  ;;  %v606_v57 = vsub.f32 %v568_v15, %v596_v42 }
 0x896   :  { %v601_v45 = vsub.f32 %v597_v44, %v599_v43 }
 0x897   :  { %v594_v46 = vpop.xlane.xlu0 %593 }
 0x898   :  { %v607_v47 = vadd.f32 1e-05, %v601_v45  ;;  %v598_v49 = vmul.f32 0.03125, %v594_v46 }
 0x89a   :  { %2364 = vrsqrt.f32 %v607_v47  ;;  %v602_v50 = vsub.f32 %v598_v49, %v600_v48 }
 0x89c   :  { %v608_v51 = vadd.f32 1e-05, %v602_v50 }
 0x89e   :  { %2366 = vrsqrt.f32 %v608_v51 }
 0x8a4   :  { %v2365_v53 = vpop.eup %2364 }
 0x8a5   :  { %v611_v55 = vmul.f32 %v2365_v53, %v603_v52  ;;  %v613_v58 = vmul.f32 %v2365_v53, %v605_v54 }
 0x8a7   :  { %v615_v61 = vmax.f32 %v611_v55, 0.0  ;;  %v617_v0 = vmax.f32 %v613_v58, 0.0 }
 0x8a8   :  { %v2367_v59 = vpop.eup %2366 }
 0x8a9   :  { %v612_v60 = vmul.f32 %v2367_v59, %v604_v56  ;;  %v614_v62 = vmul.f32 %v2367_v59, %v606_v57  ;;  %v2574_v2 = vadd.f32 %v615_v61, %v2487_v20  ;;  %v2585_v6 = vadd.f32 %v617_v0, %v2495_v24  ;;  %v1951_v20 = vld [vmem:[%s2888_s4 + $0x40] sm:$0xff]  ;;  %v1953_v24 = vld [vmem:[%s2888_s4 + $0x50] sm:$0xff] }
 0x8aa   :  { %v629_v10 = vpack.c.bf16 %v1954_v9, %v1953_v24 }
 0x8ab   :  { %v616_v63 = vmax.f32 %v612_v60, 0.0  ;;  %v618_v1 = vmax.f32 %v614_v62, 0.0 }
 0x8ad   :  { %v2577_v3 = vadd.f32 %v616_v63, %v2489_v21  ;;  %v2580_v4 = vadd.f32 %v618_v1, %v2491_v22  ;;  %v1952_v21 = vld [vmem:[%s2888_s4 + $0x48] sm:$0xff] }
 0x8ae   :  { %v628_v22 = vpack.c.bf16 %v1952_v21, %v1951_v20 }
 0x8af   :  { %v632_v5 = vpack.c.bf16 %v2577_v3, %v2574_v2  ;;  %v633_v7 = vpack.c.bf16 %v2580_v4, %v2585_v6 }
 0x8b0   :  { %2149 = vmatprep.subr.bf16.mxu0 %v628_v22 }
 0x8b1   :  { %2141 = vmatprep.subr.bf16.mxu1 %v632_v5  ;;  %2150 = vmatpush3.bf16.msra.mxu0 %v628_v22 }
 0x8b2   :  { %2142 = vmatpush3.bf16.msra.mxu1 %v632_v5  ;;  %2151 = vmatprep.subr.bf16.mxu0 %v629_v10 }
 0x8b3   :  { %2143 = vmatprep.subr.bf16.mxu1 %v633_v7 }
 0x8b5   :  { %2152 = vmatpush3.bf16.msra.mxu0 %v629_v10 }
 0x8b6   :  { %2144 = vmatpush3.bf16.msra.mxu1 %v633_v7 }
 0x8b9   :  { %2146 = vmatmul.mubr.msk.bf16.vlgmr.msra.gmra.mrb[12].mxu1 %vm45_vm0, %v2467_v11 }
 0x8ba   :  { %2161 = vmatprep.mubr.msk.bf16.mxu1 %vm45_vm0, %v2457_v8 }
 0x98c   :  { %v2147_v12 = vpop.f32.mrb[12].mxu1 }
 0x98d   :  { %v668_v13 = vpop.f32.mrb[13].mxu1 }
 0x98e   :  { %v2148_v14 = vpop.f32.mrb[14].mxu1 }
 0x98f   :  { %v2291_v15 = vpack.i.bf16 %v2148_v14, %v2147_v12  ;;  %v671_v16 = vpop.f32.mrb[15].mxu1 }
 0x990   :  { %v2286_v17 = vpack.i.bf16 %v671_v16, %v668_v13 }
 0x991   :  { %2292 = vrot.lane.b32.xlu1 %v2291_v15, %s2393_s30 }
 0x992   :  { %2287 = vrot.lane.b32.xlu0 %v2286_v17, %s2393_s30 }
 0xa03   :  { %v2293_v18 = vpop.permute.xlu1 %2292 }
 0xa04   :  { %v2295_v19 = vunpack.i.h.bf16 %v2293_v18  ;;  %v2294_v23 = vunpack.i.l.bf16 %v2293_v18  ;;  %v2288_v25 = vpop.permute.xlu0 %2287 }
 0xa05   :  { %v2290_v26 = vunpack.i.h.bf16 %v2288_v25  ;;  %v2289_v27 = vunpack.i.l.bf16 %v2288_v25 }
 0xa06   :  { %v702_v28 = vsel %vm190_vm4, %v2580_v4, %v2295_v19  ;;  %v701_v29 = vsel %vm190_vm4, %v2585_v6, %v2294_v23 }
 0xa07   :  { %v700_v30 = vsel %vm190_vm4, %v2577_v3, %v2290_v26  ;;  %v699_v31 = vsel %vm190_vm4, %v2574_v2, %v2289_v27  ;;  %v704_v33 = vpack.c.bf16 %v702_v28, %v701_v29 }
 0xa08   :  { %v703_v32 = vpack.c.bf16 %v700_v30, %v699_v31  ;;  %v1961_v31 = vld [vmem:[%s2888_s4 + $0x60] sm:$0xff] }
 0xa0a   :  { %2153 = vmatprep.mubr.msk.bf16.mxu0 %vm45_vm0, %v703_v32  ;;  %v1962_v32 = vld [vmem:[%s2888_s4 + $0x68] sm:$0xff] }
 0xa0b   :  { %2154 = vmatmul.mubr.msk.bf16.vlgmr.msra.gmra.mrb[12].mxu0 %vm45_vm0, %v704_v33  ;;  %v819_v33 = vpack.c.bf16 %v1962_v32, %v1961_v31 }
 0xa0d   :  { %2165 = vmatprep.subr.bf16.mxu0 %v819_v33 }
 0xa0e   :  { %2166 = vmatpush3.bf16.msra.mxu0 %v819_v33 }
 0xade   :  { %v2155_v35 = vpop.f32.mrb[12].mxu0 }
 0xadf   :  { %v760_v36 = vadd.f32 %v2155_v35, %v1958_v34  ;;  %v751_v37 = vpop.f32.mrb[13].mxu0  ;;  %v1964_v35 = vld [vmem:[%s2888_s4 + $0x78] sm:$0xff] }
 0xae0   :  { %v752_v38 = vadd.f32 %v1958_v34, %v751_v37  ;;  %v2156_v39 = vpop.f32.mrb[14].mxu0 }
 0xae1   :  { %v763_v40 = vadd.f32 %v2156_v39, %v1958_v34  ;;  %v754_v41 = vpop.f32.mrb[15].mxu0  ;;  %v767_v42 = vsel %vm190_vm4, %v760_v36, 0.0  ;;  %v778_v43 = vmul.f32 %v760_v36, %v760_v36 }
 0xae2   :  { %v755_v44 = vadd.f32 %v1958_v34, %v754_v41  ;;  %v766_v45 = vsel %vm190_vm4, %v752_v38, 0.0  ;;  %v776_v46 = vmul.f32 %v752_v38, %v752_v38  ;;  %v1963_v34 = vld [vmem:[%s2888_s4 + $0x70] sm:$0xff] }
 0xae3   :  { %v768_v47 = vadd.f32 %v767_v42, %v766_v45  ;;  %v772_v48 = vsel %vm190_vm4, %v763_v40, 0.0  ;;  %v781_v49 = vsel %vm190_vm4, %v778_v43, 0.0  ;;  %v779_v53 = vmul.f32 %v763_v40, %v763_v40 }
 0xae4   :  { %v771_v50 = vsel %vm190_vm4, %v755_v44, 0.0  ;;  %v780_v51 = vsel %vm190_vm4, %v776_v46, 0.0  ;;  %v777_v52 = vmul.f32 %v755_v44, %v755_v44 }
 0xae5   :  { %769 = vadd.xlane.f32.xlu0 %v768_v47  ;;  %v773_v54 = vadd.f32 %v772_v48, %v771_v50  ;;  %v782_v55 = vadd.f32 %v781_v49, %v780_v51  ;;  %v786_v57 = vsel %vm190_vm4, %v779_v53, 0.0 }
 0xae6   :  { %v785_v56 = vsel %vm190_vm4, %v777_v52, 0.0 }
 0xae7   :  { %774 = vadd.xlane.f32.xlu1 %v773_v54  ;;  %v787_v58 = vadd.f32 %v786_v57, %v785_v56 }
 0xae9   :  { %783 = vadd.xlane.f32.xlu0 %v782_v55  ;;  %v1968_v55 = vld [vmem:[%s2889_s5 + $0x3] ss:$0 sm:$0xff] }
 0xaed   :  { %788 = vadd.xlane.f32.xlu0 %v787_v58 }
 0xb72   :  { %v770_v59 = vpop.xlane.xlu0 %769 }
 0xb73   :  { %v790_v60 = vmul.f32 0.03125, %v770_v59 }
 0xb74   :  { %v775_v61 = vpop.xlane.xlu1 %774 }
 0xb75   :  { %v791_v63 = vmul.f32 0.03125, %v775_v61  ;;  %v794_v0 = vmul.f32 %v790_v60, %v790_v60  ;;  %v798_v12 = vsub.f32 %v752_v38, %v790_v60  ;;  %v800_v13 = vsub.f32 %v760_v36, %v790_v60 }
 0xb76   :  { %v784_v62 = vpop.xlane.xlu0 %783  ;;  %v820_v36 = vpack.c.bf16 %v1964_v35, %v1963_v34 }
 0xb77   :  { %v792_v1 = vmul.f32 0.03125, %v784_v62  ;;  %v795_v21 = vmul.f32 %v791_v63, %v791_v63  ;;  %v799_v14 = vsub.f32 %v755_v44, %v791_v63  ;;  %v801_v15 = vsub.f32 %v763_v40, %v791_v63 }
 0xb78   :  { %2167 = vmatprep.subr.bf16.mxu0 %v820_v36 }
 0xb79   :  { %v796_v5 = vsub.f32 %v792_v1, %v794_v0  ;;  %2168 = vmatpush3.bf16.msra.mxu0 %v820_v36 }
 0xb7a   :  { %v789_v7 = vpop.xlane.xlu0 %788 }
 0xb7b   :  { %v802_v20 = vadd.f32 1e-05, %v796_v5  ;;  %v793_v22 = vmul.f32 0.03125, %v789_v7 }
 0xb7d   :  { %2368 = vrsqrt.f32 %v802_v20  ;;  %v797_v24 = vsub.f32 %v793_v22, %v795_v21 }
 0xb7f   :  { %v803_v9 = vadd.f32 1e-05, %v797_v24 }
 0xb81   :  { %2370 = vrsqrt.f32 %v803_v9 }
 0xb87   :  { %v2369_v10 = vpop.eup %2368 }
 0xb88   :  { %v806_v16 = vmul.f32 %v2369_v10, %v798_v12  ;;  %v808_v19 = vmul.f32 %v2369_v10, %v800_v13 }
 0xb8a   :  { %v810_v25 = vmax.f32 %v806_v16, 0.0  ;;  %v812_v29 = vmax.f32 %v808_v19, 0.0 }
 0xb8b   :  { %v2371_v17 = vpop.eup %2370 }
 0xb8c   :  { %v807_v18 = vmul.f32 %v2371_v17, %v799_v14  ;;  %v809_v23 = vmul.f32 %v2371_v17, %v801_v15 }
 0xb8e   :  { %v811_v26 = vmax.f32 %v807_v18, 0.0  ;;  %v813_v27 = vmax.f32 %v809_v23, 0.0 }
 0xb90   :  { %v823_v28 = vpack.c.bf16 %v811_v26, %v810_v25  ;;  %v824_v30 = vpack.c.bf16 %v813_v27, %v812_v29 }
 0xb92   :  { %2157 = vmatprep.subr.bf16.mxu1 %v823_v28 }
 0xb93   :  { %2158 = vmatpush3.bf16.msra.mxu1 %v823_v28 }
 0xb94   :  { %2159 = vmatprep.subr.bf16.mxu1 %v824_v30 }
 0xb97   :  { %2160 = vmatpush3.bf16.msra.mxu1 %v824_v30 }
 0xb9a   :  { %2162 = vmatmul.mubr.msk.bf16.vlgmr.msra.gmra.mrb[16].mxu1 %vm45_vm0, %v2467_v11 }
 0xb9b   :  { %2177 = vmatprep.mubr.msk.bf16.mxu1 %vm45_vm0, %v2457_v8 }
 0xc6d   :  { %v2163_v37 = vpop.f32.mrb[16].mxu1 }
 0xc6e   :  { %v859_v38 = vpop.f32.mrb[17].mxu1 }
 0xc6f   :  { %v2164_v39 = vpop.f32.mrb[18].mxu1 }
 0xc70   :  { %v2301_v40 = vpack.i.bf16 %v2164_v39, %v2163_v37  ;;  %v862_v41 = vpop.f32.mrb[19].mxu1 }
 0xc71   :  { %v2296_v42 = vpack.i.bf16 %v862_v41, %v859_v38 }
 0xc72   :  { %2302 = vrot.lane.b32.xlu1 %v2301_v40, %s2393_s30 }
 0xc73   :  { %2297 = vrot.lane.b32.xlu0 %v2296_v42, %s2393_s30 }
 0xce4   :  { %v2303_v43 = vpop.permute.xlu1 %2302 }
 0xce5   :  { %v2305_v44 = vunpack.i.h.bf16 %v2303_v43  ;;  %v2304_v45 = vunpack.i.l.bf16 %v2303_v43  ;;  %v2298_v46 = vpop.permute.xlu0 %2297 }
 0xce6   :  { %v2300_v47 = vunpack.i.h.bf16 %v2298_v46  ;;  %v2299_v48 = vunpack.i.l.bf16 %v2298_v46 }
 0xce7   :  { %v893_v49 = vsel %vm190_vm4, %v813_v27, %v2305_v44  ;;  %v892_v50 = vsel %vm190_vm4, %v812_v29, %v2304_v45 }
 0xce8   :  { %v891_v51 = vsel %vm190_vm4, %v811_v26, %v2300_v47  ;;  %v890_v52 = vsel %vm190_vm4, %v810_v25, %v2299_v48  ;;  %v895_v54 = vpack.c.bf16 %v893_v49, %v892_v50 }
 0xce9   :  { %v894_v53 = vpack.c.bf16 %v891_v51, %v890_v52 }
 0xceb   :  { %2169 = vmatprep.mubr.msk.bf16.mxu0 %vm45_vm0, %v894_v53 }
 0xcec   :  { %2170 = vmatmul.mubr.msk.bf16.vlgmr.msra.gmra.mrb[16].mxu0 %vm45_vm0, %v895_v54 }
 0xdbf   :  { %v2171_v56 = vpop.f32.mrb[16].mxu0 }
 0xdc0   :  { %v951_v57 = vadd.f32 %v2171_v56, %v1968_v55  ;;  %v942_v58 = vpop.f32.mrb[17].mxu0  ;;  %v1974_v56 = vld [vmem:[%s2888_s4 + $0x98] sm:$0xff] }
 0xdc1   :  { %v943_v59 = vadd.f32 %v1968_v55, %v942_v58  ;;  %v2172_v60 = vpop.f32.mrb[18].mxu0 }
 0xdc2   :  { %v954_v61 = vadd.f32 %v2172_v60, %v1968_v55  ;;  %v945_v62 = vpop.f32.mrb[19].mxu0  ;;  %v958_v63 = vsel %vm190_vm4, %v951_v57, 0.0  ;;  %v969_v7 = vmul.f32 %v951_v57, %v951_v57 }
 0xdc3   :  { %v946_v0 = vadd.f32 %v1968_v55, %v945_v62  ;;  %v957_v1 = vsel %vm190_vm4, %v943_v59, 0.0  ;;  %v967_v5 = vmul.f32 %v943_v59, %v943_v59 }
 0xdc4   :  { %v959_v20 = vadd.f32 %v958_v63, %v957_v1  ;;  %v963_v21 = vsel %vm190_vm4, %v954_v61, 0.0  ;;  %v970_v22 = vmul.f32 %v954_v61, %v954_v61  ;;  %v972_v15 = vsel %vm190_vm4, %v969_v7, 0.0 }
 0xdc5   :  { %v962_v24 = vsel %vm190_vm4, %v946_v0, 0.0  ;;  %v968_v9 = vmul.f32 %v946_v0, %v946_v0  ;;  %v971_v14 = vsel %vm190_vm4, %v967_v5, 0.0 }
 0xdc6   :  { %960 = vadd.xlane.f32.xlu1 %v959_v20  ;;  %v964_v10 = vadd.f32 %v963_v21, %v962_v24  ;;  %v977_v12 = vsel %vm190_vm4, %v970_v22, 0.0  ;;  %v973_v17 = vadd.f32 %v972_v15, %v971_v14  ;;  %v1978_v14 = vld [vmem:[%s2889_s5 + $0x4] ss:$0 sm:$0xff] }
 0xdc7   :  { %v976_v13 = vsel %vm190_vm4, %v968_v9, 0.0 }
 0xdc8   :  { %965 = vadd.xlane.f32.xlu0 %v964_v10  ;;  %v978_v16 = vadd.f32 %v977_v12, %v976_v13 }
 0xdca   :  { %979 = vadd.xlane.f32.xlu1 %v978_v16 }
 0xdcc   :  { %974 = vadd.xlane.f32.xlu0 %v973_v17 }
 0xe53   :  { %v961_v18 = vpop.xlane.xlu1 %960 }
 0xe54   :  { %v981_v23 = vmul.f32 0.03125, %v961_v18 }
 0xe55   :  { %v966_v19 = vpop.xlane.xlu0 %965 }
 0xe56   :  { %v982_v25 = vmul.f32 0.03125, %v966_v19  ;;  %v985_v32 = vmul.f32 %v981_v23, %v981_v23  ;;  %v989_v39 = vsub.f32 %v943_v59, %v981_v23  ;;  %v991_v40 = vsub.f32 %v951_v57, %v981_v23 }
 0xe57   :  { %v980_v26 = vpop.xlane.xlu1 %979 }
 0xe58   :  { %v986_v27 = vmul.f32 %v982_v25, %v982_v25  ;;  %v984_v28 = vmul.f32 0.03125, %v980_v26  ;;  %v990_v36 = vsub.f32 %v946_v0, %v982_v25  ;;  %v992_v37 = vsub.f32 %v954_v61, %v982_v25 }
 0xe59   :  { %v975_v29 = vpop.xlane.xlu0 %974 }
 0xe5a   :  { %v988_v30 = vsub.f32 %v984_v28, %v986_v27  ;;  %v983_v31 = vmul.f32 0.03125, %v975_v29 }
 0xe5c   :  { %v994_v33 = vadd.f32 1e-05, %v988_v30  ;;  %v987_v34 = vsub.f32 %v983_v31, %v985_v32 }
 0xe5e   :  { %2372 = vrsqrt.f32 %v994_v33  ;;  %v993_v35 = vadd.f32 1e-05, %v987_v34 }
 0xe60   :  { %2374 = vrsqrt.f32 %v993_v35 }
 0xe68   :  { %v2373_v38 = vpop.eup %2372 }
 0xe69   :  { %v998_v41 = vmul.f32 %v2373_v38, %v990_v36  ;;  %v1000_v42 = vmul.f32 %v2373_v38, %v992_v37 }
 0xe6a   :  { %v2375_v43 = vpop.eup %2374 }
 0xe6b   :  { %v997_v44 = vmul.f32 %v2375_v43, %v989_v39  ;;  %v1002_v45 = vmax.f32 %v998_v41, 0.0  ;;  %v999_v46 = vmul.f32 %v2375_v43, %v991_v40  ;;  %v1004_v49 = vmax.f32 %v1000_v42, 0.0 }
 0xe6d   :  { %v1001_v47 = vmax.f32 %v997_v44, 0.0  ;;  %v1003_v48 = vmax.f32 %v999_v46, 0.0  ;;  %v2667_v51 = vadd.f32 %v1002_v45, %v2577_v3  ;;  %v2675_v54 = vadd.f32 %v1004_v49, %v2580_v4  ;;  %v1972_v3 = vld [vmem:[%s2888_s4 + $0x88] sm:$0xff] }
 0xe6f   :  { %v2664_v50 = vadd.f32 %v1001_v47, %v2574_v2  ;;  %v2670_v52 = vadd.f32 %v1003_v48, %v2585_v6  ;;  %v1971_v2 = vld [vmem:[%s2888_s4 + $0x80] sm:$0xff]  ;;  %v1973_v6 = vld [vmem:[%s2888_s4 + $0x90] sm:$0xff] }
 0xe70   :  { %v1014_v4 = vpack.c.bf16 %v1972_v3, %v1971_v2  ;;  %v1015_v57 = vpack.c.bf16 %v1974_v56, %v1973_v6 }
 0xe71   :  { %v1018_v53 = vpack.c.bf16 %v2667_v51, %v2664_v50  ;;  %v1019_v55 = vpack.c.bf16 %v2675_v54, %v2670_v52 }
 0xe72   :  { %2181 = vmatprep.subr.bf16.mxu0 %v1014_v4 }
 0xe73   :  { %2173 = vmatprep.subr.bf16.mxu1 %v1018_v53  ;;  %2182 = vmatpush3.bf16.msra.mxu0 %v1014_v4 }
 0xe74   :  { %2174 = vmatpush3.bf16.msra.mxu1 %v1018_v53  ;;  %2183 = vmatprep.subr.bf16.mxu0 %v1015_v57 }
 0xe75   :  { %2175 = vmatprep.subr.bf16.mxu1 %v1019_v55 }
 0xe77   :  { %2184 = vmatpush3.bf16.msra.mxu0 %v1015_v57 }
 0xe78   :  { %2176 = vmatpush3.bf16.msra.mxu1 %v1019_v55 }
 0xe7b   :  { %2178 = vmatmul.mubr.msk.bf16.vlgmr.msra.gmra.mrb[20].mxu1 %vm45_vm0, %v2467_v11 }
 0xe7c   :  { %2193 = vmatprep.mubr.msk.bf16.mxu1 %vm45_vm0, %v2457_v8 }
 0xf4e   :  { %v2179_v58 = vpop.f32.mrb[20].mxu1 }
 0xf4f   :  { %v1054_v59 = vpop.f32.mrb[21].mxu1 }
 0xf50   :  { %v2180_v60 = vpop.f32.mrb[22].mxu1 }
 0xf51   :  { %v2311_v61 = vpack.i.bf16 %v2180_v60, %v2179_v58  ;;  %v1057_v62 = vpop.f32.mrb[23].mxu1 }
 0xf52   :  { %v2306_v63 = vpack.i.bf16 %v1057_v62, %v1054_v59 }
 0xf53   :  { %2312 = vrot.lane.b32.xlu1 %v2311_v61, %s2393_s30 }
 0xf54   :  { %2307 = vrot.lane.b32.xlu0 %v2306_v63, %s2393_s30 }
 0xfc5   :  { %v2313_v0 = vpop.permute.xlu1 %2312 }
 0xfc6   :  { %v2315_v1 = vunpack.i.h.bf16 %v2313_v0  ;;  %v2314_v5 = vunpack.i.l.bf16 %v2313_v0  ;;  %v2308_v7 = vpop.permute.xlu0 %2307 }
 0xfc7   :  { %v2310_v20 = vunpack.i.h.bf16 %v2308_v7  ;;  %v2309_v21 = vunpack.i.l.bf16 %v2308_v7 }
 0xfc8   :  { %v1088_v22 = vsel %vm190_vm4, %v2675_v54, %v2315_v1  ;;  %v1087_v24 = vsel %vm190_vm4, %v2670_v52, %v2314_v5 }
 0xfc9   :  { %v1086_v9 = vsel %vm190_vm4, %v2667_v51, %v2310_v20  ;;  %v1085_v10 = vsel %vm190_vm4, %v2664_v50, %v2309_v21  ;;  %v1090_v13 = vpack.c.bf16 %v1088_v22, %v1087_v24 }
 0xfca   :  { %v1089_v12 = vpack.c.bf16 %v1086_v9, %v1085_v10  ;;  %v1981_v10 = vld [vmem:[%s2888_s4 + $0xa0] sm:$0xff] }
 0xfcc   :  { %2185 = vmatprep.mubr.msk.bf16.mxu0 %vm45_vm0, %v1089_v12  ;;  %v1982_v12 = vld [vmem:[%s2888_s4 + $0xa8] sm:$0xff] }
 0xfcd   :  { %2186 = vmatmul.mubr.msk.bf16.vlgmr.msra.gmra.mrb[20].mxu0 %vm45_vm0, %v1090_v13  ;;  %v1205_v13 = vpack.c.bf16 %v1982_v12, %v1981_v10 }
 0xfcf   :  { %2197 = vmatprep.subr.bf16.mxu0 %v1205_v13 }
 0xfd0   :  { %2198 = vmatpush3.bf16.msra.mxu0 %v1205_v13 }
0x10a0   :  { %v2187_v15 = vpop.f32.mrb[20].mxu0 }
0x10a1   :  { %v1146_v16 = vadd.f32 %v2187_v15, %v1978_v14  ;;  %v1137_v17 = vpop.f32.mrb[21].mxu0  ;;  %v1984_v15 = vld [vmem:[%s2888_s4 + $0xb8] sm:$0xff] }
0x10a2   :  { %v1138_v18 = vadd.f32 %v1978_v14, %v1137_v17  ;;  %v2188_v19 = vpop.f32.mrb[22].mxu0 }
0x10a3   :  { %v1149_v23 = vadd.f32 %v2188_v19, %v1978_v14  ;;  %v1140_v25 = vpop.f32.mrb[23].mxu0  ;;  %v1153_v26 = vsel %vm190_vm4, %v1146_v16, 0.0  ;;  %v1164_v30 = vmul.f32 %v1146_v16, %v1146_v16 }
0x10a4   :  { %v1141_v27 = vadd.f32 %v1978_v14, %v1140_v25  ;;  %v1152_v28 = vsel %vm190_vm4, %v1138_v18, 0.0  ;;  %v1162_v29 = vmul.f32 %v1138_v18, %v1138_v18  ;;  %v1983_v14 = vld [vmem:[%s2888_s4 + $0xb0] sm:$0xff] }
0x10a5   :  { %v1154_v31 = vadd.f32 %v1153_v26, %v1152_v28  ;;  %v1158_v32 = vsel %vm190_vm4, %v1149_v23, 0.0  ;;  %v1165_v33 = vmul.f32 %v1149_v23, %v1149_v23  ;;  %v1167_v40 = vsel %vm190_vm4, %v1164_v30, 0.0 }
0x10a6   :  { %v1157_v34 = vsel %vm190_vm4, %v1141_v27, 0.0  ;;  %v1163_v35 = vmul.f32 %v1141_v27, %v1141_v27  ;;  %v1166_v39 = vsel %vm190_vm4, %v1162_v29, 0.0 }
0x10a7   :  { %1155 = vadd.xlane.f32.xlu1 %v1154_v31  ;;  %v1159_v36 = vadd.f32 %v1158_v32, %v1157_v34  ;;  %v1172_v37 = vsel %vm190_vm4, %v1165_v33, 0.0  ;;  %v1168_v42 = vadd.f32 %v1167_v40, %v1166_v39  ;;  %v1988_v39 = vld [vmem:[%s2889_s5 + $0x5] ss:$0 sm:$0xff] }
0x10a8   :  { %v1171_v38 = vsel %vm190_vm4, %v1163_v35, 0.0 }
0x10a9   :  { %1160 = vadd.xlane.f32.xlu0 %v1159_v36  ;;  %v1173_v41 = vadd.f32 %v1172_v37, %v1171_v38 }
0x10ab   :  { %1174 = vadd.xlane.f32.xlu1 %v1173_v41 }
0x10ad   :  { %1169 = vadd.xlane.f32.xlu0 %v1168_v42 }
0x1134   :  { %v1156_v43 = vpop.xlane.xlu1 %1155 }
0x1135   :  { %v1176_v45 = vmul.f32 0.03125, %v1156_v43 }
0x1136   :  { %v1161_v44 = vpop.xlane.xlu0 %1160 }
0x1137   :  { %v1177_v46 = vmul.f32 0.03125, %v1161_v44  ;;  %v1180_v3 = vmul.f32 %v1176_v45, %v1176_v45  ;;  %v1184_v59 = vsub.f32 %v1138_v18, %v1176_v45  ;;  %v1186_v60 = vsub.f32 %v1146_v16, %v1176_v45 }
0x1138   :  { %v1175_v47 = vpop.xlane.xlu1 %1174  ;;  %v1206_v16 = vpack.c.bf16 %v1984_v15, %v1983_v14 }
0x1139   :  { %v1181_v48 = vmul.f32 %v1177_v46, %v1177_v46  ;;  %v1179_v49 = vmul.f32 0.03125, %v1175_v47  ;;  %v1185_v57 = vsub.f32 %v1141_v27, %v1177_v46  ;;  %v1187_v61 = vsub.f32 %v1149_v23, %v1177_v46 }
0x113a   :  { %v1170_v53 = vpop.xlane.xlu0 %1169  ;;  %2199 = vmatprep.subr.bf16.mxu0 %v1206_v16 }
0x113b   :  { %v1183_v55 = vsub.f32 %v1179_v49, %v1181_v48  ;;  %v1178_v2 = vmul.f32 0.03125, %v1170_v53  ;;  %2200 = vmatpush3.bf16.msra.mxu0 %v1206_v16 }
0x113d   :  { %v1189_v4 = vadd.f32 1e-05, %v1183_v55  ;;  %v1182_v6 = vsub.f32 %v1178_v2, %v1180_v3 }
0x113f   :  { %2376 = vrsqrt.f32 %v1189_v4  ;;  %v1188_v56 = vadd.f32 1e-05, %v1182_v6 }
0x1141   :  { %2378 = vrsqrt.f32 %v1188_v56 }
0x1149   :  { %v2377_v58 = vpop.eup %2376 }
0x114a   :  { %v1193_v62 = vmul.f32 %v2377_v58, %v1185_v57  ;;  %v1195_v5 = vmul.f32 %v2377_v58, %v1187_v61 }
0x114b   :  { %v2379_v63 = vpop.eup %2378 }
0x114c   :  { %v1192_v0 = vmul.f32 %v2379_v63, %v1184_v59  ;;  %v1194_v1 = vmul.f32 %v2379_v63, %v1186_v60  ;;  %v1197_v20 = vmax.f32 %v1193_v62, 0.0  ;;  %v1199_v24 = vmax.f32 %v1195_v5, 0.0 }
0x114e   :  { %v1196_v7 = vmax.f32 %v1192_v0, 0.0  ;;  %v1198_v21 = vmax.f32 %v1194_v1, 0.0 }
0x1150   :  { %v1209_v22 = vpack.c.bf16 %v1197_v20, %v1196_v7  ;;  %v1210_v9 = vpack.c.bf16 %v1199_v24, %v1198_v21 }
0x1152   :  { %2189 = vmatprep.subr.bf16.mxu1 %v1209_v22 }
0x1153   :  { %2190 = vmatpush3.bf16.msra.mxu1 %v1209_v22 }
0x1154   :  { %2191 = vmatprep.subr.bf16.mxu1 %v1210_v9 }
0x1157   :  { %2192 = vmatpush3.bf16.msra.mxu1 %v1210_v9 }
0x115a   :  { %2194 = vmatmul.mubr.msk.bf16.vlgmr.msra.gmra.mrb[24].mxu1 %vm45_vm0, %v2467_v11 }
0x115b   :  { %2209 = vmatprep.mubr.msk.bf16.mxu1 %vm45_vm0, %v2457_v8 }
0x122d   :  { %v2195_v17 = vpop.f32.mrb[24].mxu1 }
0x122e   :  { %v1245_v18 = vpop.f32.mrb[25].mxu1 }
0x122f   :  { %v2196_v19 = vpop.f32.mrb[26].mxu1 }
0x1230   :  { %v2321_v23 = vpack.i.bf16 %v2196_v19, %v2195_v17  ;;  %v1248_v25 = vpop.f32.mrb[27].mxu1 }
0x1231   :  { %v2316_v26 = vpack.i.bf16 %v1248_v25, %v1245_v18 }
0x1232   :  { %2322 = vrot.lane.b32.xlu1 %v2321_v23, %s2393_s30 }
0x1233   :  { %2317 = vrot.lane.b32.xlu0 %v2316_v26, %s2393_s30 }
0x12a4   :  { %v2323_v27 = vpop.permute.xlu1 %2322 }
0x12a5   :  { %v2325_v28 = vunpack.i.h.bf16 %v2323_v27  ;;  %v2324_v29 = vunpack.i.l.bf16 %v2323_v27  ;;  %v2318_v30 = vpop.permute.xlu0 %2317 }
0x12a6   :  { %v2320_v31 = vunpack.i.h.bf16 %v2318_v30  ;;  %v2319_v32 = vunpack.i.l.bf16 %v2318_v30 }
0x12a7   :  { %v1279_v33 = vsel %vm190_vm4, %v1199_v24, %v2325_v28  ;;  %v1278_v34 = vsel %vm190_vm4, %v1198_v21, %v2324_v29 }
0x12a8   :  { %v1277_v35 = vsel %vm190_vm4, %v1197_v20, %v2320_v31  ;;  %v1276_v36 = vsel %vm190_vm4, %v1196_v7, %v2319_v32  ;;  %v1281_v38 = vpack.c.bf16 %v1279_v33, %v1278_v34 }
0x12a9   :  { %v1280_v37 = vpack.c.bf16 %v1277_v35, %v1276_v36 }
0x12ab   :  { %2201 = vmatprep.mubr.msk.bf16.mxu0 %vm45_vm0, %v1280_v37 }
0x12ac   :  { %2202 = vmatmul.mubr.msk.bf16.vlgmr.msra.gmra.mrb[24].mxu0 %vm45_vm0, %v1281_v38 }
0x137f   :  { %v2203_v40 = vpop.f32.mrb[24].mxu0 }
0x1380   :  { %v1337_v41 = vadd.f32 %v2203_v40, %v1988_v39  ;;  %v1328_v42 = vpop.f32.mrb[25].mxu0  ;;  %v1994_v40 = vld [vmem:[%s2888_s4 + $0xd8] sm:$0xff] }
0x1381   :  { %v1329_v43 = vadd.f32 %v1988_v39, %v1328_v42  ;;  %v2204_v44 = vpop.f32.mrb[26].mxu0 }
0x1382   :  { %v1340_v45 = vadd.f32 %v2204_v44, %v1988_v39  ;;  %v1331_v46 = vpop.f32.mrb[27].mxu0  ;;  %v1344_v47 = vsel %vm190_vm4, %v1337_v41, 0.0  ;;  %v1355_v55 = vmul.f32 %v1337_v41, %v1337_v41 }
0x1383   :  { %v1332_v48 = vadd.f32 %v1988_v39, %v1331_v46  ;;  %v1343_v49 = vsel %vm190_vm4, %v1329_v43, 0.0  ;;  %v1353_v53 = vmul.f32 %v1329_v43, %v1329_v43 }
0x1384   :  { %v1345_v2 = vadd.f32 %v1344_v47, %v1343_v49  ;;  %v1349_v3 = vsel %vm190_vm4, %v1340_v45, 0.0  ;;  %v1356_v4 = vmul.f32 %v1340_v45, %v1340_v45  ;;  %v1358_v61 = vsel %vm190_vm4, %v1355_v55, 0.0 }
0x1385   :  { %v1348_v6 = vsel %vm190_vm4, %v1332_v48, 0.0  ;;  %v1354_v56 = vmul.f32 %v1332_v48, %v1332_v48  ;;  %v1357_v60 = vsel %vm190_vm4, %v1353_v53, 0.0 }
0x1386   :  { %1346 = vadd.xlane.f32.xlu1 %v1345_v2  ;;  %v1350_v57 = vadd.f32 %v1349_v3, %v1348_v6  ;;  %v1363_v58 = vsel %vm190_vm4, %v1356_v4, 0.0  ;;  %v1359_v63 = vadd.f32 %v1358_v61, %v1357_v60  ;;  %v1998_v60 = vld [vmem:[%s2889_s5 + $0x6] ss:$0 sm:$0xff] }
0x1387   :  { %v1362_v59 = vsel %vm190_vm4, %v1354_v56, 0.0 }
0x1388   :  { %1351 = vadd.xlane.f32.xlu0 %v1350_v57  ;;  %v1364_v62 = vadd.f32 %v1363_v58, %v1362_v59 }
0x138a   :  { %1365 = vadd.xlane.f32.xlu1 %v1364_v62 }
0x138c   :  { %1360 = vadd.xlane.f32.xlu0 %v1359_v63 }
0x1413   :  { %v1347_v0 = vpop.xlane.xlu1 %1346 }
0x1414   :  { %v1367_v5 = vmul.f32 0.03125, %v1347_v0 }
0x1415   :  { %v1352_v1 = vpop.xlane.xlu0 %1351 }
0x1416   :  { %v1368_v7 = vmul.f32 0.03125, %v1352_v1  ;;  %v1371_v12 = vmul.f32 %v1367_v5, %v1367_v5  ;;  %v1375_v19 = vsub.f32 %v1329_v43, %v1367_v5  ;;  %v1377_v23 = vsub.f32 %v1337_v41, %v1367_v5 }
0x1417   :  { %v1366_v20 = vpop.xlane.xlu1 %1365 }
0x1418   :  { %v1372_v21 = vmul.f32 %v1368_v7, %v1368_v7  ;;  %v1370_v22 = vmul.f32 0.03125, %v1366_v20  ;;  %v1376_v16 = vsub.f32 %v1332_v48, %v1368_v7  ;;  %v1378_v17 = vsub.f32 %v1340_v45, %v1368_v7 }
0x1419   :  { %v1361_v24 = vpop.xlane.xlu0 %1360 }
0x141a   :  { %v1374_v9 = vsub.f32 %v1370_v22, %v1372_v21  ;;  %v1369_v10 = vmul.f32 0.03125, %v1361_v24 }
0x141c   :  { %v1380_v13 = vadd.f32 1e-05, %v1374_v9  ;;  %v1373_v14 = vsub.f32 %v1369_v10, %v1371_v12 }
0x141e   :  { %2380 = vrsqrt.f32 %v1380_v13  ;;  %v1379_v15 = vadd.f32 1e-05, %v1373_v14 }
0x1420   :  { %2382 = vrsqrt.f32 %v1379_v15 }
0x1428   :  { %v2381_v18 = vpop.eup %2380 }
0x1429   :  { %v1384_v25 = vmul.f32 %v2381_v18, %v1376_v16  ;;  %v1386_v26 = vmul.f32 %v2381_v18, %v1378_v17 }
0x142a   :  { %v2383_v27 = vpop.eup %2382 }
0x142b   :  { %v1383_v28 = vmul.f32 %v2383_v27, %v1375_v19  ;;  %v1388_v29 = vmax.f32 %v1384_v25, 0.0  ;;  %v1385_v30 = vmul.f32 %v2383_v27, %v1377_v23  ;;  %v1390_v33 = vmax.f32 %v1386_v26, 0.0 }
0x142d   :  { %v1387_v31 = vmax.f32 %v1383_v28, 0.0  ;;  %v1389_v32 = vmax.f32 %v1385_v30, 0.0  ;;  %v2757_v35 = vadd.f32 %v1388_v29, %v2667_v51  ;;  %v2765_v38 = vadd.f32 %v1390_v33, %v2675_v54  ;;  %v1992_v51 = vld [vmem:[%s2888_s4 + $0xc8] sm:$0xff]  ;;  %v1993_v54 = vld [vmem:[%s2888_s4 + $0xd0] sm:$0xff] }
0x142e   :  { %v1401_v41 = vpack.c.bf16 %v1994_v40, %v1993_v54 }
0x142f   :  { %v2754_v34 = vadd.f32 %v1387_v31, %v2664_v50  ;;  %v2760_v36 = vadd.f32 %v1389_v32, %v2670_v52  ;;  %v1991_v50 = vld [vmem:[%s2888_s4 + $0xc0] sm:$0xff] }
0x1430   :  { %v1400_v52 = vpack.c.bf16 %v1992_v51, %v1991_v50 }
0x1431   :  { %v1404_v37 = vpack.c.bf16 %v2757_v35, %v2754_v34  ;;  %v1405_v39 = vpack.c.bf16 %v2765_v38, %v2760_v36 }
0x1432   :  { %2213 = vmatprep.subr.bf16.mxu0 %v1400_v52 }
0x1433   :  { %2205 = vmatprep.subr.bf16.mxu1 %v1404_v37  ;;  %2214 = vmatpush3.bf16.msra.mxu0 %v1400_v52 }
0x1434   :  { %2206 = vmatpush3.bf16.msra.mxu1 %v1404_v37  ;;  %2215 = vmatprep.subr.bf16.mxu0 %v1401_v41 }
0x1435   :  { %2207 = vmatprep.subr.bf16.mxu1 %v1405_v39 }
0x1437   :  { %2216 = vmatpush3.bf16.msra.mxu0 %v1401_v41 }
0x1438   :  { %2208 = vmatpush3.bf16.msra.mxu1 %v1405_v39 }
0x143b   :  { %2210 = vmatmul.mubr.msk.bf16.vlgmr.msra.gmra.mrb[28].mxu1 %vm45_vm0, %v2467_v11 }
0x143c   :  { %2225 = vmatprep.mubr.msk.bf16.mxu1 %vm45_vm0, %v2457_v8 }
0x150e   :  { %v2211_v42 = vpop.f32.mrb[28].mxu1 }
0x150f   :  { %v1440_v43 = vpop.f32.mrb[29].mxu1 }
0x1510   :  { %v2212_v44 = vpop.f32.mrb[30].mxu1 }
0x1511   :  { %v2331_v45 = vpack.i.bf16 %v2212_v44, %v2211_v42  ;;  %v1443_v46 = vpop.f32.mrb[31].mxu1 }
0x1512   :  { %v2326_v47 = vpack.i.bf16 %v1443_v46, %v1440_v43 }
0x1513   :  { %2332 = vrot.lane.b32.xlu1 %v2331_v45, %s2393_s30 }
0x1514   :  { %2327 = vrot.lane.b32.xlu0 %v2326_v47, %s2393_s30 }
0x1585   :  { %v2333_v48 = vpop.permute.xlu1 %2332 }
0x1586   :  { %v2335_v49 = vunpack.i.h.bf16 %v2333_v48  ;;  %v2334_v53 = vunpack.i.l.bf16 %v2333_v48  ;;  %v2328_v55 = vpop.permute.xlu0 %2327 }
0x1587   :  { %v2330_v2 = vunpack.i.h.bf16 %v2328_v55  ;;  %v2329_v3 = vunpack.i.l.bf16 %v2328_v55 }
0x1588   :  { %v1474_v4 = vsel %vm190_vm4, %v2765_v38, %v2335_v49  ;;  %v1473_v6 = vsel %vm190_vm4, %v2760_v36, %v2334_v53 }
0x1589   :  { %v1472_v56 = vsel %vm190_vm4, %v2757_v35, %v2330_v2  ;;  %v1471_v57 = vsel %vm190_vm4, %v2754_v34, %v2329_v3  ;;  %v1476_v59 = vpack.c.bf16 %v1474_v4, %v1473_v6 }
0x158a   :  { %v1475_v58 = vpack.c.bf16 %v1472_v56, %v1471_v57  ;;  %v2001_v57 = vld [vmem:[%s2888_s4 + $0xe0] sm:$0xff] }
0x158c   :  { %2217 = vmatprep.mubr.msk.bf16.mxu0 %vm45_vm0, %v1475_v58  ;;  %v2002_v58 = vld [vmem:[%s2888_s4 + $0xe8] sm:$0xff] }
0x158d   :  { %2218 = vmatmul.mubr.msk.bf16.vlgmr.msra.gmra.mrb[28].mxu0 %vm45_vm0, %v1476_v59  ;;  %v1591_v59 = vpack.c.bf16 %v2002_v58, %v2001_v57 }
0x158f   :  { %2229 = vmatprep.subr.bf16.mxu0 %v1591_v59 }
0x1590   :  { %2230 = vmatpush3.bf16.msra.mxu0 %v1591_v59 }
0x1660   :  { %v2219_v61 = vpop.f32.mrb[28].mxu0 }
0x1661   :  { %v1532_v62 = vadd.f32 %v2219_v61, %v1998_v60  ;;  %v1523_v63 = vpop.f32.mrb[29].mxu0  ;;  %v2004_v61 = vld [vmem:[%s2888_s4 + $0xf8] sm:$0xff] }
0x1662   :  { %v1524_v0 = vadd.f32 %v1998_v60, %v1523_v63  ;;  %v2220_v1 = vpop.f32.mrb[30].mxu0 }
0x1663   :  { %v1535_v5 = vadd.f32 %v2220_v1, %v1998_v60  ;;  %v1526_v7 = vpop.f32.mrb[31].mxu0  ;;  %v1539_v20 = vsel %vm190_vm4, %v1532_v62, 0.0  ;;  %v1550_v9 = vmul.f32 %v1532_v62, %v1532_v62 }
0x1664   :  { %v1527_v21 = vadd.f32 %v1998_v60, %v1526_v7  ;;  %v1538_v22 = vsel %vm190_vm4, %v1524_v0, 0.0  ;;  %v1548_v24 = vmul.f32 %v1524_v0, %v1524_v0  ;;  %v2003_v60 = vld [vmem:[%s2888_s4 + $0xf0] sm:$0xff] }
0x1665   :  { %v1540_v10 = vadd.f32 %v1539_v20, %v1538_v22  ;;  %v1544_v12 = vsel %vm190_vm4, %v1535_v5, 0.0  ;;  %v1551_v13 = vmul.f32 %v1535_v5, %v1535_v5  ;;  %v1553_v23 = vsel %vm190_vm4, %v1550_v9, 0.0 }
0x1666   :  { %v1543_v14 = vsel %vm190_vm4, %v1527_v21, 0.0  ;;  %v1549_v15 = vmul.f32 %v1527_v21, %v1527_v21  ;;  %v1552_v19 = vsel %vm190_vm4, %v1548_v24, 0.0 }
0x1667   :  { %1541 = vadd.xlane.f32.xlu1 %v1540_v10  ;;  %v1545_v16 = vadd.f32 %v1544_v12, %v1543_v14  ;;  %v1558_v17 = vsel %vm190_vm4, %v1551_v13, 0.0  ;;  %v1554_v26 = vadd.f32 %v1553_v23, %v1552_v19 }
0x1668   :  { %v1557_v18 = vsel %vm190_vm4, %v1549_v15, 0.0 }
0x1669   :  { %1546 = vadd.xlane.f32.xlu0 %v1545_v16  ;;  %v1559_v25 = vadd.f32 %v1558_v17, %v1557_v18  ;;  %v2008_v18 = vld [vmem:[%s2889_s5 + $0x7] ss:$0 sm:$0xff] }
0x166b   :  { %1560 = vadd.xlane.f32.xlu1 %v1559_v25 }
0x166d   :  { %1555 = vadd.xlane.f32.xlu0 %v1554_v26 }
0x16f4   :  { %v1542_v27 = vpop.xlane.xlu1 %1541 }
0x16f5   :  { %v1562_v29 = vmul.f32 0.03125, %v1542_v27 }
0x16f6   :  { %v1547_v28 = vpop.xlane.xlu0 %1546 }
0x16f7   :  { %v1563_v30 = vmul.f32 0.03125, %v1547_v28  ;;  %v1566_v51 = vmul.f32 %v1562_v29, %v1562_v29  ;;  %v1570_v43 = vsub.f32 %v1524_v0, %v1562_v29  ;;  %v1572_v44 = vsub.f32 %v1532_v62, %v1562_v29 }
0x16f8   :  { %v1561_v31 = vpop.xlane.xlu1 %1560 }
0x16f9   :  { %v1567_v32 = vmul.f32 %v1563_v30, %v1563_v30  ;;  %v1565_v33 = vmul.f32 0.03125, %v1561_v31  ;;  %v1571_v41 = vsub.f32 %v1527_v21, %v1563_v30  ;;  %v1573_v45 = vsub.f32 %v1535_v5, %v1563_v30 }
0x16fa   :  { %v1556_v37 = vpop.xlane.xlu0 %1555 }
0x16fb   :  { %v1569_v39 = vsub.f32 %v1565_v33, %v1567_v32  ;;  %v1564_v50 = vmul.f32 0.03125, %v1556_v37 }
0x16fd   :  { %v1575_v52 = vadd.f32 1e-05, %v1569_v39  ;;  %v1568_v54 = vsub.f32 %v1564_v50, %v1566_v51 }
0x16ff   :  { %2384 = vrsqrt.f32 %v1575_v52  ;;  %v1574_v40 = vadd.f32 1e-05, %v1568_v54 }
0x1701   :  { %2386 = vrsqrt.f32 %v1574_v40 }
0x1709   :  { %v2385_v42 = vpop.eup %2384 }
0x170a   :  { %v1579_v46 = vmul.f32 %v2385_v42, %v1571_v41  ;;  %v1581_v53 = vmul.f32 %v2385_v42, %v1573_v45 }
0x170b   :  { %v2387_v47 = vpop.eup %2386 }
0x170c   :  { %v1578_v48 = vmul.f32 %v2387_v47, %v1570_v43  ;;  %v1580_v49 = vmul.f32 %v2387_v47, %v1572_v44  ;;  %v1583_v2 = vmax.f32 %v1579_v46, 0.0  ;;  %v1585_v6 = vmax.f32 %v1581_v53, 0.0 }
0x170e   :  { %v1582_v55 = vmax.f32 %v1578_v48, 0.0  ;;  %v1584_v3 = vmax.f32 %v1580_v49, 0.0 }
0x1710   :  { %v1595_v4 = vpack.c.bf16 %v1583_v2, %v1582_v55  ;;  %v1596_v56 = vpack.c.bf16 %v1585_v6, %v1584_v3 }
0x1712   :  { %2221 = vmatprep.subr.bf16.mxu1 %v1595_v4 }
0x1713   :  { %2222 = vmatpush3.bf16.msra.mxu1 %v1595_v4 }
0x1714   :  { %2223 = vmatprep.subr.bf16.mxu1 %v1596_v56 }
0x1717   :  { %2224 = vmatpush3.bf16.msra.mxu1 %v1596_v56 }
0x171a   :  { %2226 = vmatmul.mubr.msk.bf16.vlgmr.msra.gmra.mrb[32].mxu1 %vm45_vm0, %v2467_v11 }
0x171b   :  { %2241 = vmatprep.mubr.msk.bf16.mxu1 %vm45_vm0, %v2457_v8  ;;  %v1592_v8 = vpack.c.bf16 %v2004_v61, %v2003_v60 }
0x171d   :  { %2231 = vmatprep.subr.bf16.mxu0 %v1592_v8 }
0x171e   :  { %2232 = vmatpush3.bf16.msra.mxu0 %v1592_v8 }
0x17ed   :  { %v2227_v62 = vpop.f32.mrb[32].mxu1 }
0x17ee   :  { %v1631_v63 = vpop.f32.mrb[33].mxu1 }
0x17ef   :  { %v2228_v0 = vpop.f32.mrb[34].mxu1 }
0x17f0   :  { %v2341_v1 = vpack.i.bf16 %v2228_v0, %v2227_v62  ;;  %v1634_v5 = vpop.f32.mrb[35].mxu1 }
0x17f1   :  { %v2336_v7 = vpack.i.bf16 %v1634_v5, %v1631_v63 }
0x17f2   :  { %2342 = vrot.lane.b32.xlu1 %v2341_v1, %s2393_s30 }
0x17f3   :  { %2337 = vrot.lane.b32.xlu0 %v2336_v7, %s2393_s30 }
0x1864   :  { %v2343_v20 = vpop.permute.xlu1 %2342 }
0x1865   :  { %v2345_v21 = vunpack.i.h.bf16 %v2343_v20  ;;  %v2344_v22 = vunpack.i.l.bf16 %v2343_v20  ;;  %v2338_v24 = vpop.permute.xlu0 %2337 }
0x1866   :  { %v2340_v9 = vunpack.i.h.bf16 %v2338_v24  ;;  %v2339_v10 = vunpack.i.l.bf16 %v2338_v24 }
0x1867   :  { %v1665_v12 = vsel %vm190_vm4, %v1585_v6, %v2345_v21  ;;  %v1664_v13 = vsel %vm190_vm4, %v1584_v3, %v2344_v22 }
0x1868   :  { %v1663_v14 = vsel %vm190_vm4, %v1583_v2, %v2340_v9  ;;  %v1662_v15 = vsel %vm190_vm4, %v1582_v55, %v2339_v10  ;;  %v1667_v17 = vpack.c.bf16 %v1665_v12, %v1664_v13 }
0x1869   :  { %v1666_v16 = vpack.c.bf16 %v1663_v14, %v1662_v15 }
0x186b   :  { %2233 = vmatprep.mubr.msk.bf16.mxu0 %vm45_vm0, %v1666_v16 }
0x186c   :  { %2234 = vmatmul.mubr.msk.bf16.vlgmr.msra.gmra.mrb[32].mxu0 %vm45_vm0, %v1667_v17 }
0x193f   :  { %v2235_v19 = vpop.f32.mrb[32].mxu0 }
0x1940   :  { %v1723_v23 = vadd.f32 %v2235_v19, %v2008_v18  ;;  %v1714_v25 = vpop.f32.mrb[33].mxu0 }
0x1941   :  { %v1715_v26 = vadd.f32 %v2008_v18, %v1714_v25  ;;  %v2236_v27 = vpop.f32.mrb[34].mxu0 }
0x1942   :  { %v1726_v28 = vadd.f32 %v2236_v27, %v2008_v18  ;;  %v1717_v29 = vpop.f32.mrb[35].mxu0  ;;  %v1730_v30 = vsel %vm190_vm4, %v1723_v23, 0.0  ;;  %v1741_v37 = vmul.f32 %v1723_v23, %v1723_v23 }
0x1943   :  { %v1718_v31 = vadd.f32 %v2008_v18, %v1717_v29  ;;  %v1729_v32 = vsel %vm190_vm4, %v1715_v26, 0.0  ;;  %v1739_v33 = vmul.f32 %v1715_v26, %v1715_v26  ;;  %v1781_v18 = vld [vmem:[%s2890_s6] sm:$0xff] }
0x1944   :  { %v1731_v39 = vadd.f32 %v1730_v30, %v1729_v32  ;;  %v1735_v50 = vsel %vm190_vm4, %v1726_v28, 0.0  ;;  %v1742_v51 = vmul.f32 %v1726_v28, %v1726_v28  ;;  %v1744_v44 = vsel %vm190_vm4, %v1741_v37, 0.0 }
0x1945   :  { %v1734_v52 = vsel %vm190_vm4, %v1718_v31, 0.0  ;;  %v1740_v54 = vmul.f32 %v1718_v31, %v1718_v31  ;;  %v1743_v43 = vsel %vm190_vm4, %v1739_v33, 0.0 }
0x1946   :  { %1732 = vadd.xlane.f32.xlu1 %v1731_v39  ;;  %v1736_v40 = vadd.f32 %v1735_v50, %v1734_v52  ;;  %v1749_v41 = vsel %vm190_vm4, %v1742_v51, 0.0  ;;  %v1745_v46 = vadd.f32 %v1744_v44, %v1743_v43 }
0x1947   :  { %v1748_v42 = vsel %vm190_vm4, %v1740_v54, 0.0 }
0x1948   :  { %1737 = vadd.xlane.f32.xlu0 %v1736_v40  ;;  %v1750_v45 = vadd.f32 %v1749_v41, %v1748_v42  ;;  %v2013_v41 = vld [vmem:[%s2891_s7] ss:$0 sm:$0xff] }
0x194a   :  { %1751 = vadd.xlane.f32.xlu1 %v1750_v45 }
0x194c   :  { %1746 = vadd.xlane.f32.xlu0 %v1745_v46 }
0x19d3   :  { %v1733_v47 = vpop.xlane.xlu1 %1732 }
0x19d4   :  { %v1753_v49 = vmul.f32 0.03125, %v1733_v47 }
0x19d5   :  { %v1738_v48 = vpop.xlane.xlu0 %1737 }
0x19d6   :  { %v1754_v53 = vmul.f32 0.03125, %v1738_v48  ;;  %v1757_v57 = vmul.f32 %v1753_v49, %v1753_v49  ;;  %v1761_v63 = vsub.f32 %v1715_v26, %v1753_v49  ;;  %v1763_v0 = vsub.f32 %v1723_v23, %v1753_v49 }
0x19d7   :  { %v1752_v55 = vpop.xlane.xlu1 %1751 }
0x19d8   :  { %v1758_v2 = vmul.f32 %v1754_v53, %v1754_v53  ;;  %v1756_v3 = vmul.f32 0.03125, %v1752_v55  ;;  %v1762_v61 = vsub.f32 %v1718_v31, %v1754_v53  ;;  %v1764_v8 = vsub.f32 %v1726_v28, %v1754_v53 }
0x19d9   :  { %v1747_v4 = vpop.xlane.xlu0 %1746 }
0x19da   :  { %v1760_v6 = vsub.f32 %v1756_v3, %v1758_v2  ;;  %v1755_v56 = vmul.f32 0.03125, %v1747_v4 }
0x19dc   :  { %v1766_v58 = vadd.f32 1e-05, %v1760_v6  ;;  %v1759_v59 = vsub.f32 %v1755_v56, %v1757_v57 }
0x19de   :  { %2388 = vrsqrt.f32 %v1766_v58  ;;  %v1765_v60 = vadd.f32 1e-05, %v1759_v59 }
0x19e0   :  { %2390 = vrsqrt.f32 %v1765_v60 }
0x19e8   :  { %v2389_v62 = vpop.eup %2388 }
0x19e9   :  { %v1770_v1 = vmul.f32 %v2389_v62, %v1762_v61  ;;  %v1772_v5 = vmul.f32 %v2389_v62, %v1764_v8 }
0x19ea   :  { %v2391_v7 = vpop.eup %2390 }
0x19eb   :  { %v1769_v20 = vmul.f32 %v2391_v7, %v1761_v63  ;;  %v1774_v21 = vmax.f32 %v1770_v1, 0.0  ;;  %v1771_v22 = vmul.f32 %v2391_v7, %v1763_v0  ;;  %v1776_v10 = vmax.f32 %v1772_v5, 0.0 }
0x19ed   :  { %v1773_v24 = vmax.f32 %v1769_v20, 0.0  ;;  %v1775_v9 = vmax.f32 %v1771_v22, 0.0  ;;  %v1778_v13 = vadd.f32 %v1774_v21, %v2757_v35  ;;  %v1780_v16 = vadd.f32 %v1776_v10, %v2765_v38  ;;  %v1784_v38 = vld [vmem:[%s2890_s6 + $0x18] sm:$0xff] }
0x19ef   :  { %v1777_v12 = vadd.f32 %v1773_v24, %v2754_v34  ;;  %v1779_v14 = vadd.f32 %v1775_v9, %v2760_v36  ;;  %v1782_v34 = vld [vmem:[%s2890_s6 + $0x8] sm:$0xff]  ;;  %v1783_v36 = vld [vmem:[%s2890_s6 + $0x10] sm:$0xff] }
0x19f0   :  { %v1785_v35 = vpack.c.bf16 %v1782_v34, %v1781_v18 }
0x19f1   :  { %v1788_v15 = vpack.c.bf16 %v1778_v13, %v1777_v12  ;;  %v1789_v17 = vpack.c.bf16 %v1780_v16, %v1779_v14 }
0x19f2   :  { %2245 = vmatprep.subr.bf16.mxu0 %v1785_v35 }
0x19f3   :  { %2237 = vmatprep.subr.bf16.mxu1 %v1788_v15  ;;  %2246 = vmatpush3.bf16.msra.mxu0 %v1785_v35 }
0x19f4   :  { %2238 = vmatpush3.bf16.msra.mxu1 %v1788_v15 }
0x19f5   :  { %2239 = vmatprep.subr.bf16.mxu1 %v1789_v17 }
0x19f8   :  { %2240 = vmatpush3.bf16.msra.mxu1 %v1789_v17 }
0x19fb   :  { %2242 = vmatmul.mubr.msk.bf16.vlgmr.msra.gmra.mrb[36].mxu1 %vm45_vm0, %v2467_v11  ;;  %v1786_v11 = vpack.c.bf16 %v1784_v38, %v1783_v36 }
0x19fd   :  { %2247 = vmatprep.subr.bf16.mxu0 %v1786_v11 }
0x19fe   :  { %2248 = vmatpush3.bf16.msra.mxu0 %v1786_v11 }
0x1ace   :  { %v2243_v19 = vpop.f32.mrb[36].mxu1 }
0x1acf   :  { %v1824_v23 = vpop.f32.mrb[37].mxu1 }
0x1ad0   :  { %v2244_v25 = vpop.f32.mrb[38].mxu1 }
0x1ad1   :  { %v2351_v26 = vpack.i.bf16 %v2244_v25, %v2243_v19  ;;  %v1827_v27 = vpop.f32.mrb[39].mxu1 }
0x1ad2   :  { %v2346_v28 = vpack.i.bf16 %v1827_v27, %v1824_v23 }
0x1ad3   :  { %2352 = vrot.lane.b32.xlu1 %v2351_v26, %s2393_s30 }
0x1ad4   :  { %2347 = vrot.lane.b32.xlu0 %v2346_v28, %s2393_s30 }
0x1b45   :  { %v2353_v29 = vpop.permute.xlu1 %2352 }
0x1b46   :  { %v2355_v30 = vunpack.i.h.bf16 %v2353_v29  ;;  %v2354_v31 = vunpack.i.l.bf16 %v2353_v29  ;;  %v2348_v32 = vpop.permute.xlu0 %2347 }
0x1b47   :  { %v2350_v33 = vunpack.i.h.bf16 %v2348_v32  ;;  %v2349_v37 = vunpack.i.l.bf16 %v2348_v32 }
0x1b48   :  { %v1858_v39 = vsel %vm190_vm4, %v1780_v16, %v2355_v30  ;;  %v1857_v50 = vsel %vm190_vm4, %v1779_v14, %v2354_v31 }
0x1b49   :  { %v1856_v51 = vsel %vm190_vm4, %v1778_v13, %v2350_v33  ;;  %v1855_v52 = vsel %vm190_vm4, %v1777_v12, %v2349_v37  ;;  %v1860_v40 = vpack.c.bf16 %v1858_v39, %v1857_v50 }
0x1b4a   :  { %v1859_v54 = vpack.c.bf16 %v1856_v51, %v1855_v52 }
0x1b4c   :  { %2249 = vmatprep.mubr.msk.bf16.mxu0 %vm45_vm0, %v1859_v54 }
0x1b4d   :  { %2250 = vmatmul.mubr.msk.bf16.vlgmr.msra.gmra.mrb[36].mxu0 %vm45_vm0, %v1860_v40 }
0x1c20   :  { %v2251_v42 = vpop.f32.mrb[36].mxu0 }
0x1c21   :  { %v1916_v43 = vadd.f32 %v2251_v42, %v2013_v41  ;;  %v1907_v44 = vpop.f32.mrb[37].mxu0 }
0x1c22   :  { %v1908_v45 = vadd.f32 %v2013_v41, %v1907_v44  ;;  %v2252_v46 = vpop.f32.mrb[38].mxu0 }
0x1c23   :  { %1925 = vst.msk [vmem:[%s2892_s8 + $0x10] sm:$0xff] %vm1922_vm5, %v1916_v43  ;;  %v1919_v47 = vadd.f32 %v2252_v46, %v2013_v41  ;;  %v1910_v48 = vpop.f32.mrb[39].mxu0 }
0x1c24   :  { %1923 = vst.msk [vmem:[%s2892_s8] sm:$0xff] %vm1922_vm5, %v1908_v45  ;;  %v1911_v49 = vadd.f32 %v2013_v41, %v1910_v48 }
0x1c25   :  { %1926 = vst.msk [vmem:[%s2892_s8 + $0x18] sm:$0xff] %vm1922_vm5, %v1919_v47 }
0x1c26   :  { %1924 = vst.msk [vmem:[%s2892_s8 + $0x8] sm:$0xff] %vm1922_vm5, %v1911_v49 }

</bundles_post_ra>
